<compile_context>
chip_gen: v7x
topology: tpu7x:2x2x1
jax: 0.10.0
libtpu: 0.0.40
codegen_flags: <defaults>
</compile_context>

<pallas_src>
import math

import jax
import jax.numpy as jnp
from jax import lax
from jax.experimental import pallas as pl
from jax.experimental.pallas import tpu as pltpu

HIDDEN = 256
LN_EPS = 1e-5


def _layernorm(x, gamma, beta):
    # LayerNorm over last dim (biased variance, like PyTorch).  f32 math.
    mu = jnp.mean(x, axis=-1, keepdims=True)
    var = jnp.mean((x - mu) * (x - mu), axis=-1, keepdims=True)
    return (x - mu) * lax.rsqrt(var + LN_EPS) * gamma + beta


def _graph_kernel(mrow_ref, mcol_ref, f_ref, w4_ref, cw_ref, small_ref, o_ref):
    """One batch element, all layers, resident in VMEM.

    mrow_ref  : [1, N]       node mask (row view)                       f32
    mcol_ref  : [N, 1]       node mask (column view)                    f32
    f_ref     : [N, H]       node features                              f32
    w4_ref    : [D, H, 4H]   q|k|v|lin weights (q pre-scaled by 1/16)   bf16
    cw_ref    : [D, H, H]    linear_cross_attn weights                  bf16
    small_ref : [D, 11, H]   packed biases / LayerNorm params           f32
    o_ref     : [N, H]       output features                            f32
    """
    N, H = f_ref.shape
    depth = w4_ref.shape[0]

    # Additive attention-mask bias, rebuilt from O(N) mask data (layer-invariant).
    am = mcol_ref[...] * mrow_ref[...]                  # (N, N), values {0, 1}
    attn_bias = am - 100000.0 * (1.0 - am)

    x = f_ref[...]                                      # (N, H) f32

    for layer in range(depth):                          # DEPTH small -> unroll
        w4 = w4_ref[layer]                              # (H, 4H) bf16
        cw = cw_ref[layer]                              # (H, H)  bf16
        sm = small_ref[layer]                           # (11, H) f32

        # Fused q|k|v|residual projection: one bf16 MXU matmul, f32 accumulate.
        proj = jnp.dot(x.astype(jnp.bfloat16), w4,
                       preferred_element_type=jnp.float32)          # (N, 4H)
        q = proj[:, 0 * H:1 * H] + sm[0:1]              # 1/sqrt(H) folded in
        k = proj[:, 1 * H:2 * H] + sm[1:2]
        v = proj[:, 2 * H:3 * H] + sm[2:3]
        lin = proj[:, 3 * H:4 * H] + sm[3:4]

        # scores = q @ k^T + mask bias ; softmax in f32.
        scores = jnp.einsum("nh,mh->nm",
                            q.astype(jnp.bfloat16), k.astype(jnp.bfloat16),
                            preferred_element_type=jnp.float32) + attn_bias
        scores = scores - jnp.max(scores, axis=-1, keepdims=True)
        e = jnp.exp(scores)
        p = e * pl.reciprocal(jnp.sum(e, axis=-1, keepdims=True), approx=True)

        # cross attention feats + LayerNorm + ReLU  (GlobalAttentionLayer.norm)
        cross = jnp.dot(p.astype(jnp.bfloat16), v.astype(jnp.bfloat16),
                        preferred_element_type=jnp.float32)          # (N, H)
        cross = jnp.maximum(_layernorm(cross, sm[4:5], sm[5:6]), 0.0)

        # linear_cross_attn: Linear + LayerNorm
        cross = _layernorm(
            jnp.dot(cross.astype(jnp.bfloat16), cw,
                    preferred_element_type=jnp.float32) + sm[6:7],
            sm[7:8], sm[8:9])

        # residual path: Linear (fused into proj above) + LayerNorm on input.
        out = _layernorm(lin, sm[9:10], sm[10:11]) + cross

        if layer < depth - 1:
            out = jnp.maximum(out, 0.0)
        x = out

    o_ref[...] = x.astype(o_ref.dtype)


def _pack_params(layer_params):
    """Stack per-layer params into [D, ...]; fuse q|k|v|lin into one weight;
    fold 1/sqrt(H) into q; store matmul weights as bf16 (half HBM traffic)."""
    scale = 1.0 / math.sqrt(HIDDEN)            # 1/16: exact in f32 and bf16
    w4, cw, small = [], [], []
    for p in layer_params:
        w4.append(jnp.concatenate(
            [p["q_w"] * scale, p["k_w"], p["v_w"], p["lin_w"]],
            axis=1).astype(jnp.bfloat16))                          # [H, 4H]
        cw.append(p["cross_w"].astype(jnp.bfloat16))               # [H, H]
        small.append(jnp.concatenate([
            p["q_b"] * scale, p["k_b"], p["v_b"], p["lin_b"],      # rows 0..3
            p["attn_ln_g"], p["attn_ln_b"],                        # rows 4..5
            p["cross_b"], p["cross_ln_g"], p["cross_ln_b"],        # rows 6..8
            p["lin_ln_g"], p["lin_ln_b"],                          # rows 9..10
        ], axis=0))                                                # [11, H] f32
    return jnp.stack(w4), jnp.stack(cw), jnp.stack(small)


def global_attention_graph(feats, masks, layer_params):
    """feats: [B, N, H] f32, masks: [B, N] {0,1}."""
    B, N, H = feats.shape
    w4, cw, small = _pack_params(layer_params)
    D = w4.shape[0]

    masks = masks.astype(jnp.float32)
    mrow = masks.reshape(B, 1, N)              # [B, 1, N]
    mcol = masks.reshape(B, N, 1)              # [B, N, 1]

    return pl.pallas_call(
        _graph_kernel,
        out_shape=jax.ShapeDtypeStruct((B, N, H), jnp.float32),
        grid=(B,),
        in_specs=[
            pl.BlockSpec((None, 1, N), lambda b: (b, 0, 0)),       # mask row view
            pl.BlockSpec((None, N, 1), lambda b: (b, 0, 0)),       # mask col view
            pl.BlockSpec((None, N, H), lambda b: (b, 0, 0)),       # feats
            pl.BlockSpec((D, H, 4 * H), lambda b: (0, 0, 0)),      # q|k|v|lin W
            pl.BlockSpec((D, H, H), lambda b: (0, 0, 0)),          # cross W
            pl.BlockSpec((D, 11, H), lambda b: (0, 0, 0)),         # biases / LN
        ],
        out_specs=pl.BlockSpec((None, N, H), lambda b: (b, 0, 0)),
        compiler_params=pltpu.CompilerParams(
            dimension_semantics=("parallel",)),
    )(mrow, mcol, feats, w4, cw, small)


# ---------------- pure-JAX f32 reference (for correctness check) ----------------
def _ref_layer(feats, masks, p, apply_relu):
    def ln(x, g, b):
        mu = jnp.mean(x, -1, keepdims=True)
        var = jnp.mean((x - mu) ** 2, -1, keepdims=True)
        return (x - mu) / jnp.sqrt(var + LN_EPS) * g + b

    q = feats @ p["q_w"] + p["q_b"]
    k = feats @ p["k_w"] + p["k_b"]
    v = feats @ p["v_w"] + p["v_b"]
    scores = jnp.einsum("bnh,bmh->bnm", q, k) / math.sqrt(HIDDEN)
    am = masks[:, :, None] * masks[:, None, :]
    am = am - 100000.0 * (1.0 - am)
    scores = scores + am
    p_attn = jax.nn.softmax(scores, axis=-1)
    cross = jnp.einsum("bnm,bmh->bnh", p_attn, v)
    cross = jnp.maximum(ln(cross, p["attn_ln_g"], p["attn_ln_b"]), 0.0)
    cross = ln(cross @ p["cross_w"] + p["cross_b"], p["cross_ln_g"], p["cross_ln_b"])
    out = ln(feats @ p["lin_w"] + p["lin_b"], p["lin_ln_g"], p["lin_ln_b"]) + cross
    return jnp.maximum(out, 0.0) if apply_relu else out


def _ref_graph(feats, masks, layer_params):
    depth = len(layer_params)
    for i in range(depth):
        feats = _ref_layer(feats, masks, layer_params[i], i < depth - 1)
    return feats


# ---------------- deterministic parameter init ----------------
def make_layer_params(key):
    ks = jax.random.split(key, 8)
    H = HIDDEN

    def w(k):
        return jax.random.normal(k, (H, H), jnp.float32) * 0.02

    def b(k):
        return jax.random.normal(k, (1, H), jnp.float32) * 0.01

    return {
        "q_w": w(ks[0]), "q_b": b(ks[1]),
        "k_w": w(ks[2]), "k_b": b(ks[3]),
        "v_w": w(ks[4]), "v_b": b(ks[5]),
        "attn_ln_g": jnp.ones((1, H), jnp.float32),
        "attn_ln_b": jnp.zeros((1, H), jnp.float32),
        "cross_w": w(ks[6]), "cross_b": b(ks[7]),
        "cross_ln_g": jnp.ones((1, H), jnp.float32),
        "cross_ln_b": jnp.zeros((1, H), jnp.float32),
        "lin_w": w(jax.random.fold_in(ks[0], 7)),
        "lin_b": b(jax.random.fold_in(ks[1], 7)),
        "lin_ln_g": jnp.ones((1, H), jnp.float32),
        "lin_ln_b": jnp.zeros((1, H), jnp.float32),
    }


if __name__ == "__main__":
    B, N, H = 2, 8, HIDDEN           # batch, max_node, hidden (hidden fixed by module)
    DEPTH = 2                        # config['global_graph_depth']

    key = jax.random.PRNGKey(0)
    k_f, k_m, k_p = jax.random.split(key, 3)

    feats = jax.random.normal(k_f, (B, N, H), jnp.float32)
    masks = (jax.random.uniform(k_m, (B, N)) > 0.3).astype(jnp.float32)

    layer_params = [make_layer_params(jax.random.fold_in(k_p, i))
                    for i in range(DEPTH)]

    out = global_attention_graph(feats, masks, layer_params)
    out = jax.block_until_ready(out)

    ref = _ref_graph(feats, masks, layer_params)
    assert out.shape == (B, N, H)
    # bf16 GEMM operands => ~1e-3..1e-2 deviation vs the pure-f32 reference.
    assert jnp.allclose(out, ref, atol=5e-2, rtol=5e-2), \
        f"mismatch: max abs err {jnp.max(jnp.abs(out - ref))}"

    print("KERNEL_OK")
</pallas_src>

<mosaic_0001>
module attributes {stable_mosaic.version = 11 : i64} {
  func.func @_graph_kernel(%arg0: i32, %arg1: memref<1x1x8xf32, #tpu.memory_space<vmem>>, %arg2: memref<1x8x1xf32, #tpu.memory_space<vmem>>, %arg3: memref<1x8x256xf32, #tpu.memory_space<vmem>>, %arg4: memref<2x256x1024xbf16, #tpu.memory_space<vmem>>, %arg5: memref<2x256x256xbf16, #tpu.memory_space<vmem>>, %arg6: memref<2x11x256xf32, #tpu.memory_space<vmem>>, %arg7: memref<1x8x256xf32, #tpu.memory_space<vmem>>) attributes {dimension_semantics = [#tpu.dimension_semantics<parallel>], iteration_bounds = array<i64: 2>, scalar_prefetch = 0 : i64, scratch_operands = 0 : i64, tpu.core_type = #tpu.core_type<tc>, window_params = [{transform_indices = @transform_0, window_bounds = array<i64: 1, 1, 8>}, {transform_indices = @transform_1, window_bounds = array<i64: 1, 8, 1>}, {transform_indices = @transform_2, window_bounds = array<i64: 1, 8, 256>}, {pipeline_mode = #tpu.pipeline_mode<synchronous>, transform_indices = @transform_3, window_bounds = array<i64: 2, 256, 1024>}, {pipeline_mode = #tpu.pipeline_mode<synchronous>, transform_indices = @transform_4, window_bounds = array<i64: 2, 256, 256>}, {pipeline_mode = #tpu.pipeline_mode<synchronous>, transform_indices = @transform_5, window_bounds = array<i64: 2, 11, 256>}, {transform_indices = @transform_6, window_bounds = array<i64: 1, 8, 256>}]} {
    %c0 = arith.constant 0 : index
    %c0_0 = arith.constant 0 : index
    %c0_1 = arith.constant 0 : index
    %0 = vector.load %arg2[%c0, %c0_0, %c0_1] : memref<1x8x1xf32, #tpu.memory_space<vmem>>, vector<1x8x1xf32>
    %1 = vector.shape_cast %0 : vector<1x8x1xf32> to vector<8x1xf32>
    %c0_2 = arith.constant 0 : index
    %c0_3 = arith.constant 0 : index
    %c0_4 = arith.constant 0 : index
    %2 = vector.load %arg1[%c0_2, %c0_3, %c0_4] : memref<1x1x8xf32, #tpu.memory_space<vmem>>, vector<1x1x8xf32>
    %3 = vector.shape_cast %2 : vector<1x1x8xf32> to vector<1x8xf32>
    %4 = vector.broadcast %1 : vector<8x1xf32> to vector<8x8xf32>
    %5 = vector.broadcast %3 : vector<1x8xf32> to vector<8x8xf32>
    %6 = arith.mulf %4, %5 : vector<8x8xf32>
    %cst = arith.constant 1.000000e+00 : f32
    %7 = vector.broadcast %cst : f32 to vector<8x8xf32>
    %8 = arith.subf %7, %6 : vector<8x8xf32>
    %cst_5 = arith.constant 1.000000e+05 : f32
    %9 = vector.broadcast %cst_5 : f32 to vector<8x8xf32>
    %10 = arith.mulf %9, %8 : vector<8x8xf32>
    %11 = arith.subf %6, %10 : vector<8x8xf32>
    %c0_6 = arith.constant 0 : index
    %c0_7 = arith.constant 0 : index
    %c0_8 = arith.constant 0 : index
    %12 = vector.load %arg3[%c0_6, %c0_7, %c0_8] : memref<1x8x256xf32, #tpu.memory_space<vmem>>, vector<1x8x256xf32>
    %13 = vector.shape_cast %12 : vector<1x8x256xf32> to vector<8x256xf32>
    %c0_9 = arith.constant 0 : index
    %c0_10 = arith.constant 0 : index
    %c0_11 = arith.constant 0 : index
    %14 = vector.load %arg4[%c0_9, %c0_10, %c0_11] : memref<2x256x1024xbf16, #tpu.memory_space<vmem>>, vector<1x256x1024xbf16>
    %15 = vector.shape_cast %14 : vector<1x256x1024xbf16> to vector<256x1024xbf16>
    %c0_12 = arith.constant 0 : index
    %c0_13 = arith.constant 0 : index
    %c0_14 = arith.constant 0 : index
    %16 = vector.load %arg5[%c0_12, %c0_13, %c0_14] : memref<2x256x256xbf16, #tpu.memory_space<vmem>>, vector<1x256x256xbf16>
    %17 = vector.shape_cast %16 : vector<1x256x256xbf16> to vector<256x256xbf16>
    %c0_15 = arith.constant 0 : index
    %c0_16 = arith.constant 0 : index
    %c0_17 = arith.constant 0 : index
    %18 = vector.load %arg6[%c0_15, %c0_16, %c0_17] : memref<2x11x256xf32, #tpu.memory_space<vmem>>, vector<1x11x256xf32>
    %19 = vector.shape_cast %18 : vector<1x11x256xf32> to vector<11x256xf32>
    %20 = arith.truncf %13 : vector<8x256xf32> to vector<8x256xbf16>
    %cst_18 = arith.constant dense<0.000000e+00> : vector<8x1024xf32>
    %21 = tpu.matmul %20, %15, %cst_18 {dimension_numbers = #tpu.dot_dimension_numbers<[1], [0], [0], [1], [0, 0, 1, 1], [], []>} : vector<8x256xbf16>, vector<256x1024xbf16>, vector<8x1024xf32> -> vector<8x1024xf32>
    %22 = vector.extract_strided_slice %21 {offsets = [0, 0], sizes = [8, 256], strides = [1, 1]} : vector<8x1024xf32> to vector<8x256xf32>
    %23 = vector.extract_strided_slice %19 {offsets = [0, 0], sizes = [1, 256], strides = [1, 1]} : vector<11x256xf32> to vector<1x256xf32>
    %24 = vector.broadcast %23 : vector<1x256xf32> to vector<8x256xf32>
    %25 = arith.addf %22, %24 : vector<8x256xf32>
    %26 = vector.extract_strided_slice %21 {offsets = [0, 256], sizes = [8, 256], strides = [1, 1]} : vector<8x1024xf32> to vector<8x256xf32>
    %27 = vector.extract_strided_slice %19 {offsets = [1, 0], sizes = [1, 256], strides = [1, 1]} : vector<11x256xf32> to vector<1x256xf32>
    %28 = vector.broadcast %27 : vector<1x256xf32> to vector<8x256xf32>
    %29 = arith.addf %26, %28 : vector<8x256xf32>
    %30 = vector.extract_strided_slice %21 {offsets = [0, 512], sizes = [8, 256], strides = [1, 1]} : vector<8x1024xf32> to vector<8x256xf32>
    %31 = vector.extract_strided_slice %19 {offsets = [2, 0], sizes = [1, 256], strides = [1, 1]} : vector<11x256xf32> to vector<1x256xf32>
    %32 = vector.broadcast %31 : vector<1x256xf32> to vector<8x256xf32>
    %33 = arith.addf %30, %32 : vector<8x256xf32>
    %34 = vector.extract_strided_slice %21 {offsets = [0, 768], sizes = [8, 256], strides = [1, 1]} : vector<8x1024xf32> to vector<8x256xf32>
    %35 = vector.extract_strided_slice %19 {offsets = [3, 0], sizes = [1, 256], strides = [1, 1]} : vector<11x256xf32> to vector<1x256xf32>
    %36 = vector.broadcast %35 : vector<1x256xf32> to vector<8x256xf32>
    %37 = arith.addf %34, %36 : vector<8x256xf32>
    %38 = arith.truncf %25 : vector<8x256xf32> to vector<8x256xbf16>
    %39 = arith.truncf %29 : vector<8x256xf32> to vector<8x256xbf16>
    "tpu.trace_start"() <{level = 10 : i32, message = "nh,mh->nm"}> : () -> ()
    %cst_19 = arith.constant dense<0.000000e+00> : vector<8x8xf32>
    %40 = tpu.matmul %38, %39, %cst_19 {dimension_numbers = #tpu.dot_dimension_numbers<[1], [1], [0], [0], [0, 0, 1, 0], [], []>} : vector<8x256xbf16>, vector<8x256xbf16>, vector<8x8xf32> -> vector<8x8xf32>
    "tpu.trace_stop"() : () -> ()
    %41 = arith.addf %40, %11 : vector<8x8xf32>
    %cst_20 = arith.constant dense<0xFF800000> : vector<8xf32>
    %42 = vector.multi_reduction <maximumf>, %41, %cst_20 [1] : vector<8x8xf32> to vector<8xf32>
    %43 = vector.shape_cast %42 : vector<8xf32> to vector<8x1xf32>
    %44 = vector.broadcast %43 : vector<8x1xf32> to vector<8x8xf32>
    %45 = arith.subf %41, %44 : vector<8x8xf32>
    %46 = math.exp %45 : vector<8x8xf32>
    %cst_21 = arith.constant dense<0.000000e+00> : vector<8xf32>
    %47 = vector.multi_reduction <add>, %46, %cst_21 [1] : vector<8x8xf32> to vector<8xf32>
    %48 = vector.shape_cast %47 : vector<8xf32> to vector<8x1xf32>
    %49 = tpu.reciprocal %48 {approx = true} : vector<8x1xf32> -> vector<8x1xf32>
    %50 = vector.broadcast %49 : vector<8x1xf32> to vector<8x8xf32>
    %51 = arith.mulf %46, %50 : vector<8x8xf32>
    %52 = arith.truncf %51 : vector<8x8xf32> to vector<8x8xbf16>
    %53 = arith.truncf %33 : vector<8x256xf32> to vector<8x256xbf16>
    %cst_22 = arith.constant dense<0.000000e+00> : vector<8x256xf32>
    %54 = tpu.matmul %52, %53, %cst_22 {dimension_numbers = #tpu.dot_dimension_numbers<[1], [0], [0], [1], [0, 0, 1, 1], [], []>} : vector<8x8xbf16>, vector<8x256xbf16>, vector<8x256xf32> -> vector<8x256xf32>
    %55 = vector.extract_strided_slice %19 {offsets = [4, 0], sizes = [1, 256], strides = [1, 1]} : vector<11x256xf32> to vector<1x256xf32>
    %56 = vector.extract_strided_slice %19 {offsets = [5, 0], sizes = [1, 256], strides = [1, 1]} : vector<11x256xf32> to vector<1x256xf32>
    %cst_23 = arith.constant dense<0.000000e+00> : vector<8xf32>
    %57 = vector.multi_reduction <add>, %54, %cst_23 [1] : vector<8x256xf32> to vector<8xf32>
    %58 = vector.shape_cast %57 : vector<8xf32> to vector<8x1xf32>
    %cst_24 = arith.constant 2.560000e+02 : f32
    %59 = vector.broadcast %cst_24 : f32 to vector<8x1xf32>
    %60 = arith.divf %58, %59 : vector<8x1xf32>
    %61 = vector.broadcast %60 : vector<8x1xf32> to vector<8x256xf32>
    %62 = arith.subf %54, %61 : vector<8x256xf32>
    %63 = vector.broadcast %60 : vector<8x1xf32> to vector<8x256xf32>
    %64 = arith.subf %54, %63 : vector<8x256xf32>
    %65 = arith.mulf %62, %64 : vector<8x256xf32>
    %cst_25 = arith.constant dense<0.000000e+00> : vector<8xf32>
    %66 = vector.multi_reduction <add>, %65, %cst_25 [1] : vector<8x256xf32> to vector<8xf32>
    %67 = vector.shape_cast %66 : vector<8xf32> to vector<8x1xf32>
    %cst_26 = arith.constant 2.560000e+02 : f32
    %68 = vector.broadcast %cst_26 : f32 to vector<8x1xf32>
    %69 = arith.divf %67, %68 : vector<8x1xf32>
    %70 = vector.broadcast %60 : vector<8x1xf32> to vector<8x256xf32>
    %71 = arith.subf %54, %70 : vector<8x256xf32>
    %cst_27 = arith.constant 9.99999974E-6 : f32
    %72 = vector.broadcast %cst_27 : f32 to vector<8x1xf32>
    %73 = arith.addf %69, %72 : vector<8x1xf32>
    %74 = math.rsqrt %73 : vector<8x1xf32>
    %75 = vector.broadcast %74 : vector<8x1xf32> to vector<8x256xf32>
    %76 = arith.mulf %71, %75 : vector<8x256xf32>
    %77 = vector.broadcast %55 : vector<1x256xf32> to vector<8x256xf32>
    %78 = arith.mulf %76, %77 : vector<8x256xf32>
    %79 = vector.broadcast %56 : vector<1x256xf32> to vector<8x256xf32>
    %80 = arith.addf %78, %79 : vector<8x256xf32>
    %cst_28 = arith.constant 0.000000e+00 : f32
    %81 = vector.broadcast %cst_28 : f32 to vector<8x256xf32>
    %82 = arith.maximumf %80, %81 : vector<8x256xf32>
    %83 = arith.truncf %82 : vector<8x256xf32> to vector<8x256xbf16>
    %cst_29 = arith.constant dense<0.000000e+00> : vector<8x256xf32>
    %84 = tpu.matmul %83, %17, %cst_29 {dimension_numbers = #tpu.dot_dimension_numbers<[1], [0], [0], [1], [0, 0, 1, 1], [], []>} : vector<8x256xbf16>, vector<256x256xbf16>, vector<8x256xf32> -> vector<8x256xf32>
    %85 = vector.extract_strided_slice %19 {offsets = [6, 0], sizes = [1, 256], strides = [1, 1]} : vector<11x256xf32> to vector<1x256xf32>
    %86 = vector.broadcast %85 : vector<1x256xf32> to vector<8x256xf32>
    %87 = arith.addf %84, %86 : vector<8x256xf32>
    %88 = vector.extract_strided_slice %19 {offsets = [7, 0], sizes = [1, 256], strides = [1, 1]} : vector<11x256xf32> to vector<1x256xf32>
    %89 = vector.extract_strided_slice %19 {offsets = [8, 0], sizes = [1, 256], strides = [1, 1]} : vector<11x256xf32> to vector<1x256xf32>
    %cst_30 = arith.constant dense<0.000000e+00> : vector<8xf32>
    %90 = vector.multi_reduction <add>, %87, %cst_30 [1] : vector<8x256xf32> to vector<8xf32>
    %91 = vector.shape_cast %90 : vector<8xf32> to vector<8x1xf32>
    %cst_31 = arith.constant 2.560000e+02 : f32
    %92 = vector.broadcast %cst_31 : f32 to vector<8x1xf32>
    %93 = arith.divf %91, %92 : vector<8x1xf32>
    %94 = vector.broadcast %93 : vector<8x1xf32> to vector<8x256xf32>
    %95 = arith.subf %87, %94 : vector<8x256xf32>
    %96 = vector.broadcast %93 : vector<8x1xf32> to vector<8x256xf32>
    %97 = arith.subf %87, %96 : vector<8x256xf32>
    %98 = arith.mulf %95, %97 : vector<8x256xf32>
    %cst_32 = arith.constant dense<0.000000e+00> : vector<8xf32>
    %99 = vector.multi_reduction <add>, %98, %cst_32 [1] : vector<8x256xf32> to vector<8xf32>
    %100 = vector.shape_cast %99 : vector<8xf32> to vector<8x1xf32>
    %cst_33 = arith.constant 2.560000e+02 : f32
    %101 = vector.broadcast %cst_33 : f32 to vector<8x1xf32>
    %102 = arith.divf %100, %101 : vector<8x1xf32>
    %103 = vector.broadcast %93 : vector<8x1xf32> to vector<8x256xf32>
    %104 = arith.subf %87, %103 : vector<8x256xf32>
    %cst_34 = arith.constant 9.99999974E-6 : f32
    %105 = vector.broadcast %cst_34 : f32 to vector<8x1xf32>
    %106 = arith.addf %102, %105 : vector<8x1xf32>
    %107 = math.rsqrt %106 : vector<8x1xf32>
    %108 = vector.broadcast %107 : vector<8x1xf32> to vector<8x256xf32>
    %109 = arith.mulf %104, %108 : vector<8x256xf32>
    %110 = vector.broadcast %88 : vector<1x256xf32> to vector<8x256xf32>
    %111 = arith.mulf %109, %110 : vector<8x256xf32>
    %112 = vector.broadcast %89 : vector<1x256xf32> to vector<8x256xf32>
    %113 = arith.addf %111, %112 : vector<8x256xf32>
    %114 = vector.extract_strided_slice %19 {offsets = [9, 0], sizes = [1, 256], strides = [1, 1]} : vector<11x256xf32> to vector<1x256xf32>
    %115 = vector.extract_strided_slice %19 {offsets = [10, 0], sizes = [1, 256], strides = [1, 1]} : vector<11x256xf32> to vector<1x256xf32>
    %cst_35 = arith.constant dense<0.000000e+00> : vector<8xf32>
    %116 = vector.multi_reduction <add>, %37, %cst_35 [1] : vector<8x256xf32> to vector<8xf32>
    %117 = vector.shape_cast %116 : vector<8xf32> to vector<8x1xf32>
    %cst_36 = arith.constant 2.560000e+02 : f32
    %118 = vector.broadcast %cst_36 : f32 to vector<8x1xf32>
    %119 = arith.divf %117, %118 : vector<8x1xf32>
    %120 = vector.broadcast %119 : vector<8x1xf32> to vector<8x256xf32>
    %121 = arith.subf %37, %120 : vector<8x256xf32>
    %122 = vector.broadcast %119 : vector<8x1xf32> to vector<8x256xf32>
    %123 = arith.subf %37, %122 : vector<8x256xf32>
    %124 = arith.mulf %121, %123 : vector<8x256xf32>
    %cst_37 = arith.constant dense<0.000000e+00> : vector<8xf32>
    %125 = vector.multi_reduction <add>, %124, %cst_37 [1] : vector<8x256xf32> to vector<8xf32>
    %126 = vector.shape_cast %125 : vector<8xf32> to vector<8x1xf32>
    %cst_38 = arith.constant 2.560000e+02 : f32
    %127 = vector.broadcast %cst_38 : f32 to vector<8x1xf32>
    %128 = arith.divf %126, %127 : vector<8x1xf32>
    %129 = vector.broadcast %119 : vector<8x1xf32> to vector<8x256xf32>
    %130 = arith.subf %37, %129 : vector<8x256xf32>
    %cst_39 = arith.constant 9.99999974E-6 : f32
    %131 = vector.broadcast %cst_39 : f32 to vector<8x1xf32>
    %132 = arith.addf %128, %131 : vector<8x1xf32>
    %133 = math.rsqrt %132 : vector<8x1xf32>
    %134 = vector.broadcast %133 : vector<8x1xf32> to vector<8x256xf32>
    %135 = arith.mulf %130, %134 : vector<8x256xf32>
    %136 = vector.broadcast %114 : vector<1x256xf32> to vector<8x256xf32>
    %137 = arith.mulf %135, %136 : vector<8x256xf32>
    %138 = vector.broadcast %115 : vector<1x256xf32> to vector<8x256xf32>
    %139 = arith.addf %137, %138 : vector<8x256xf32>
    %140 = arith.addf %139, %113 : vector<8x256xf32>
    %cst_40 = arith.constant 0.000000e+00 : f32
    %141 = vector.broadcast %cst_40 : f32 to vector<8x256xf32>
    %142 = arith.maximumf %140, %141 : vector<8x256xf32>
    %c1 = arith.constant 1 : index
    %c0_41 = arith.constant 0 : index
    %c0_42 = arith.constant 0 : index
    %143 = vector.load %arg4[%c1, %c0_41, %c0_42] : memref<2x256x1024xbf16, #tpu.memory_space<vmem>>, vector<1x256x1024xbf16>
    %144 = vector.shape_cast %143 : vector<1x256x1024xbf16> to vector<256x1024xbf16>
    %c1_43 = arith.constant 1 : index
    %c0_44 = arith.constant 0 : index
    %c0_45 = arith.constant 0 : index
    %145 = vector.load %arg5[%c1_43, %c0_44, %c0_45] : memref<2x256x256xbf16, #tpu.memory_space<vmem>>, vector<1x256x256xbf16>
    %146 = vector.shape_cast %145 : vector<1x256x256xbf16> to vector<256x256xbf16>
    %c1_46 = arith.constant 1 : index
    %c0_47 = arith.constant 0 : index
    %c0_48 = arith.constant 0 : index
    %147 = vector.load %arg6[%c1_46, %c0_47, %c0_48] : memref<2x11x256xf32, #tpu.memory_space<vmem>>, vector<1x11x256xf32>
    %148 = vector.shape_cast %147 : vector<1x11x256xf32> to vector<11x256xf32>
    %149 = arith.truncf %142 : vector<8x256xf32> to vector<8x256xbf16>
    %cst_49 = arith.constant dense<0.000000e+00> : vector<8x1024xf32>
    %150 = tpu.matmul %149, %144, %cst_49 {dimension_numbers = #tpu.dot_dimension_numbers<[1], [0], [0], [1], [0, 0, 1, 1], [], []>} : vector<8x256xbf16>, vector<256x1024xbf16>, vector<8x1024xf32> -> vector<8x1024xf32>
    %151 = vector.extract_strided_slice %150 {offsets = [0, 0], sizes = [8, 256], strides = [1, 1]} : vector<8x1024xf32> to vector<8x256xf32>
    %152 = vector.extract_strided_slice %148 {offsets = [0, 0], sizes = [1, 256], strides = [1, 1]} : vector<11x256xf32> to vector<1x256xf32>
    %153 = vector.broadcast %152 : vector<1x256xf32> to vector<8x256xf32>
    %154 = arith.addf %151, %153 : vector<8x256xf32>
    %155 = vector.extract_strided_slice %150 {offsets = [0, 256], sizes = [8, 256], strides = [1, 1]} : vector<8x1024xf32> to vector<8x256xf32>
    %156 = vector.extract_strided_slice %148 {offsets = [1, 0], sizes = [1, 256], strides = [1, 1]} : vector<11x256xf32> to vector<1x256xf32>
    %157 = vector.broadcast %156 : vector<1x256xf32> to vector<8x256xf32>
    %158 = arith.addf %155, %157 : vector<8x256xf32>
    %159 = vector.extract_strided_slice %150 {offsets = [0, 512], sizes = [8, 256], strides = [1, 1]} : vector<8x1024xf32> to vector<8x256xf32>
    %160 = vector.extract_strided_slice %148 {offsets = [2, 0], sizes = [1, 256], strides = [1, 1]} : vector<11x256xf32> to vector<1x256xf32>
    %161 = vector.broadcast %160 : vector<1x256xf32> to vector<8x256xf32>
    %162 = arith.addf %159, %161 : vector<8x256xf32>
    %163 = vector.extract_strided_slice %150 {offsets = [0, 768], sizes = [8, 256], strides = [1, 1]} : vector<8x1024xf32> to vector<8x256xf32>
    %164 = vector.extract_strided_slice %148 {offsets = [3, 0], sizes = [1, 256], strides = [1, 1]} : vector<11x256xf32> to vector<1x256xf32>
    %165 = vector.broadcast %164 : vector<1x256xf32> to vector<8x256xf32>
    %166 = arith.addf %163, %165 : vector<8x256xf32>
    %167 = arith.truncf %154 : vector<8x256xf32> to vector<8x256xbf16>
    %168 = arith.truncf %158 : vector<8x256xf32> to vector<8x256xbf16>
    "tpu.trace_start"() <{level = 10 : i32, message = "nh,mh->nm"}> : () -> ()
    %cst_50 = arith.constant dense<0.000000e+00> : vector<8x8xf32>
    %169 = tpu.matmul %167, %168, %cst_50 {dimension_numbers = #tpu.dot_dimension_numbers<[1], [1], [0], [0], [0, 0, 1, 0], [], []>} : vector<8x256xbf16>, vector<8x256xbf16>, vector<8x8xf32> -> vector<8x8xf32>
    "tpu.trace_stop"() : () -> ()
    %170 = arith.addf %169, %11 : vector<8x8xf32>
    %cst_51 = arith.constant dense<0xFF800000> : vector<8xf32>
    %171 = vector.multi_reduction <maximumf>, %170, %cst_51 [1] : vector<8x8xf32> to vector<8xf32>
    %172 = vector.shape_cast %171 : vector<8xf32> to vector<8x1xf32>
    %173 = vector.broadcast %172 : vector<8x1xf32> to vector<8x8xf32>
    %174 = arith.subf %170, %173 : vector<8x8xf32>
    %175 = math.exp %174 : vector<8x8xf32>
    %cst_52 = arith.constant dense<0.000000e+00> : vector<8xf32>
    %176 = vector.multi_reduction <add>, %175, %cst_52 [1] : vector<8x8xf32> to vector<8xf32>
    %177 = vector.shape_cast %176 : vector<8xf32> to vector<8x1xf32>
    %178 = tpu.reciprocal %177 {approx = true} : vector<8x1xf32> -> vector<8x1xf32>
    %179 = vector.broadcast %178 : vector<8x1xf32> to vector<8x8xf32>
    %180 = arith.mulf %175, %179 : vector<8x8xf32>
    %181 = arith.truncf %180 : vector<8x8xf32> to vector<8x8xbf16>
    %182 = arith.truncf %162 : vector<8x256xf32> to vector<8x256xbf16>
    %cst_53 = arith.constant dense<0.000000e+00> : vector<8x256xf32>
    %183 = tpu.matmul %181, %182, %cst_53 {dimension_numbers = #tpu.dot_dimension_numbers<[1], [0], [0], [1], [0, 0, 1, 1], [], []>} : vector<8x8xbf16>, vector<8x256xbf16>, vector<8x256xf32> -> vector<8x256xf32>
    %184 = vector.extract_strided_slice %148 {offsets = [4, 0], sizes = [1, 256], strides = [1, 1]} : vector<11x256xf32> to vector<1x256xf32>
    %185 = vector.extract_strided_slice %148 {offsets = [5, 0], sizes = [1, 256], strides = [1, 1]} : vector<11x256xf32> to vector<1x256xf32>
    %cst_54 = arith.constant dense<0.000000e+00> : vector<8xf32>
    %186 = vector.multi_reduction <add>, %183, %cst_54 [1] : vector<8x256xf32> to vector<8xf32>
    %187 = vector.shape_cast %186 : vector<8xf32> to vector<8x1xf32>
    %cst_55 = arith.constant 2.560000e+02 : f32
    %188 = vector.broadcast %cst_55 : f32 to vector<8x1xf32>
    %189 = arith.divf %187, %188 : vector<8x1xf32>
    %190 = vector.broadcast %189 : vector<8x1xf32> to vector<8x256xf32>
    %191 = arith.subf %183, %190 : vector<8x256xf32>
    %192 = vector.broadcast %189 : vector<8x1xf32> to vector<8x256xf32>
    %193 = arith.subf %183, %192 : vector<8x256xf32>
    %194 = arith.mulf %191, %193 : vector<8x256xf32>
    %cst_56 = arith.constant dense<0.000000e+00> : vector<8xf32>
    %195 = vector.multi_reduction <add>, %194, %cst_56 [1] : vector<8x256xf32> to vector<8xf32>
    %196 = vector.shape_cast %195 : vector<8xf32> to vector<8x1xf32>
    %cst_57 = arith.constant 2.560000e+02 : f32
    %197 = vector.broadcast %cst_57 : f32 to vector<8x1xf32>
    %198 = arith.divf %196, %197 : vector<8x1xf32>
    %199 = vector.broadcast %189 : vector<8x1xf32> to vector<8x256xf32>
    %200 = arith.subf %183, %199 : vector<8x256xf32>
    %cst_58 = arith.constant 9.99999974E-6 : f32
    %201 = vector.broadcast %cst_58 : f32 to vector<8x1xf32>
    %202 = arith.addf %198, %201 : vector<8x1xf32>
    %203 = math.rsqrt %202 : vector<8x1xf32>
    %204 = vector.broadcast %203 : vector<8x1xf32> to vector<8x256xf32>
    %205 = arith.mulf %200, %204 : vector<8x256xf32>
    %206 = vector.broadcast %184 : vector<1x256xf32> to vector<8x256xf32>
    %207 = arith.mulf %205, %206 : vector<8x256xf32>
    %208 = vector.broadcast %185 : vector<1x256xf32> to vector<8x256xf32>
    %209 = arith.addf %207, %208 : vector<8x256xf32>
    %cst_59 = arith.constant 0.000000e+00 : f32
    %210 = vector.broadcast %cst_59 : f32 to vector<8x256xf32>
    %211 = arith.maximumf %209, %210 : vector<8x256xf32>
    %212 = arith.truncf %211 : vector<8x256xf32> to vector<8x256xbf16>
    %cst_60 = arith.constant dense<0.000000e+00> : vector<8x256xf32>
    %213 = tpu.matmul %212, %146, %cst_60 {dimension_numbers = #tpu.dot_dimension_numbers<[1], [0], [0], [1], [0, 0, 1, 1], [], []>} : vector<8x256xbf16>, vector<256x256xbf16>, vector<8x256xf32> -> vector<8x256xf32>
    %214 = vector.extract_strided_slice %148 {offsets = [6, 0], sizes = [1, 256], strides = [1, 1]} : vector<11x256xf32> to vector<1x256xf32>
    %215 = vector.broadcast %214 : vector<1x256xf32> to vector<8x256xf32>
    %216 = arith.addf %213, %215 : vector<8x256xf32>
    %217 = vector.extract_strided_slice %148 {offsets = [7, 0], sizes = [1, 256], strides = [1, 1]} : vector<11x256xf32> to vector<1x256xf32>
    %218 = vector.extract_strided_slice %148 {offsets = [8, 0], sizes = [1, 256], strides = [1, 1]} : vector<11x256xf32> to vector<1x256xf32>
    %cst_61 = arith.constant dense<0.000000e+00> : vector<8xf32>
    %219 = vector.multi_reduction <add>, %216, %cst_61 [1] : vector<8x256xf32> to vector<8xf32>
    %220 = vector.shape_cast %219 : vector<8xf32> to vector<8x1xf32>
    %cst_62 = arith.constant 2.560000e+02 : f32
    %221 = vector.broadcast %cst_62 : f32 to vector<8x1xf32>
    %222 = arith.divf %220, %221 : vector<8x1xf32>
    %223 = vector.broadcast %222 : vector<8x1xf32> to vector<8x256xf32>
    %224 = arith.subf %216, %223 : vector<8x256xf32>
    %225 = vector.broadcast %222 : vector<8x1xf32> to vector<8x256xf32>
    %226 = arith.subf %216, %225 : vector<8x256xf32>
    %227 = arith.mulf %224, %226 : vector<8x256xf32>
    %cst_63 = arith.constant dense<0.000000e+00> : vector<8xf32>
    %228 = vector.multi_reduction <add>, %227, %cst_63 [1] : vector<8x256xf32> to vector<8xf32>
    %229 = vector.shape_cast %228 : vector<8xf32> to vector<8x1xf32>
    %cst_64 = arith.constant 2.560000e+02 : f32
    %230 = vector.broadcast %cst_64 : f32 to vector<8x1xf32>
    %231 = arith.divf %229, %230 : vector<8x1xf32>
    %232 = vector.broadcast %222 : vector<8x1xf32> to vector<8x256xf32>
    %233 = arith.subf %216, %232 : vector<8x256xf32>
    %cst_65 = arith.constant 9.99999974E-6 : f32
    %234 = vector.broadcast %cst_65 : f32 to vector<8x1xf32>
    %235 = arith.addf %231, %234 : vector<8x1xf32>
    %236 = math.rsqrt %235 : vector<8x1xf32>
    %237 = vector.broadcast %236 : vector<8x1xf32> to vector<8x256xf32>
    %238 = arith.mulf %233, %237 : vector<8x256xf32>
    %239 = vector.broadcast %217 : vector<1x256xf32> to vector<8x256xf32>
    %240 = arith.mulf %238, %239 : vector<8x256xf32>
    %241 = vector.broadcast %218 : vector<1x256xf32> to vector<8x256xf32>
    %242 = arith.addf %240, %241 : vector<8x256xf32>
    %243 = vector.extract_strided_slice %148 {offsets = [9, 0], sizes = [1, 256], strides = [1, 1]} : vector<11x256xf32> to vector<1x256xf32>
    %244 = vector.extract_strided_slice %148 {offsets = [10, 0], sizes = [1, 256], strides = [1, 1]} : vector<11x256xf32> to vector<1x256xf32>
    %cst_66 = arith.constant dense<0.000000e+00> : vector<8xf32>
    %245 = vector.multi_reduction <add>, %166, %cst_66 [1] : vector<8x256xf32> to vector<8xf32>
    %246 = vector.shape_cast %245 : vector<8xf32> to vector<8x1xf32>
    %cst_67 = arith.constant 2.560000e+02 : f32
    %247 = vector.broadcast %cst_67 : f32 to vector<8x1xf32>
    %248 = arith.divf %246, %247 : vector<8x1xf32>
    %249 = vector.broadcast %248 : vector<8x1xf32> to vector<8x256xf32>
    %250 = arith.subf %166, %249 : vector<8x256xf32>
    %251 = vector.broadcast %248 : vector<8x1xf32> to vector<8x256xf32>
    %252 = arith.subf %166, %251 : vector<8x256xf32>
    %253 = arith.mulf %250, %252 : vector<8x256xf32>
    %cst_68 = arith.constant dense<0.000000e+00> : vector<8xf32>
    %254 = vector.multi_reduction <add>, %253, %cst_68 [1] : vector<8x256xf32> to vector<8xf32>
    %255 = vector.shape_cast %254 : vector<8xf32> to vector<8x1xf32>
    %cst_69 = arith.constant 2.560000e+02 : f32
    %256 = vector.broadcast %cst_69 : f32 to vector<8x1xf32>
    %257 = arith.divf %255, %256 : vector<8x1xf32>
    %258 = vector.broadcast %248 : vector<8x1xf32> to vector<8x256xf32>
    %259 = arith.subf %166, %258 : vector<8x256xf32>
    %cst_70 = arith.constant 9.99999974E-6 : f32
    %260 = vector.broadcast %cst_70 : f32 to vector<8x1xf32>
    %261 = arith.addf %257, %260 : vector<8x1xf32>
    %262 = math.rsqrt %261 : vector<8x1xf32>
    %263 = vector.broadcast %262 : vector<8x1xf32> to vector<8x256xf32>
    %264 = arith.mulf %259, %263 : vector<8x256xf32>
    %265 = vector.broadcast %243 : vector<1x256xf32> to vector<8x256xf32>
    %266 = arith.mulf %264, %265 : vector<8x256xf32>
    %267 = vector.broadcast %244 : vector<1x256xf32> to vector<8x256xf32>
    %268 = arith.addf %266, %267 : vector<8x256xf32>
    %269 = arith.addf %268, %242 : vector<8x256xf32>
    %c0_71 = arith.constant 0 : index
    %c0_72 = arith.constant 0 : index
    %c0_73 = arith.constant 0 : index
    %270 = vector.load %arg7[%c0_71, %c0_72, %c0_73] : memref<1x8x256xf32, #tpu.memory_space<vmem>>, vector<1x8x256xf32>
    %271 = vector.shape_cast %270 : vector<1x8x256xf32> to vector<8x256xf32>
    %272 = vector.shape_cast %269 : vector<8x256xf32> to vector<1x8x256xf32>
    tpu.vector_store %arg7[%c0_71, %c0_72, %c0_73], %272 {strides = array<i32>} : memref<1x8x256xf32, #tpu.memory_space<vmem>>, vector<1x8x256xf32>,
    return
  }
  func.func @transform_0(%arg0: i32) -> (i32, i32, i32) {
    %c0_i32 = arith.constant 0 : i32
    %c0_i32_0 = arith.constant 0 : i32
    %c0_i32_1 = arith.constant 0 : i32
    return %arg0, %c0_i32, %c0_i32_0 : i32, i32, i32
  }
  func.func @transform_1(%arg0: i32) -> (i32, i32, i32) {
    %c0_i32 = arith.constant 0 : i32
    %c0_i32_0 = arith.constant 0 : i32
    %c0_i32_1 = arith.constant 0 : i32
    return %arg0, %c0_i32, %c0_i32_0 : i32, i32, i32
  }
  func.func @transform_2(%arg0: i32) -> (i32, i32, i32) {
    %c0_i32 = arith.constant 0 : i32
    %c0_i32_0 = arith.constant 0 : i32
    %c0_i32_1 = arith.constant 0 : i32
    return %arg0, %c0_i32, %c0_i32_0 : i32, i32, i32
  }
  func.func @transform_3(%arg0: i32) -> (i32, i32, i32) {
    %c0_i32 = arith.constant 0 : i32
    %c0_i32_0 = arith.constant 0 : i32
    %c0_i32_1 = arith.constant 0 : i32
    %c0_i32_2 = arith.constant 0 : i32
    return %c0_i32, %c0_i32_0, %c0_i32_1 : i32, i32, i32
  }
  func.func @transform_4(%arg0: i32) -> (i32, i32, i32) {
    %c0_i32 = arith.constant 0 : i32
    %c0_i32_0 = arith.constant 0 : i32
    %c0_i32_1 = arith.constant 0 : i32
    %c0_i32_2 = arith.constant 0 : i32
    return %c0_i32, %c0_i32_0, %c0_i32_1 : i32, i32, i32
  }
  func.func @transform_5(%arg0: i32) -> (i32, i32, i32) {
    %c0_i32 = arith.constant 0 : i32
    %c0_i32_0 = arith.constant 0 : i32
    %c0_i32_1 = arith.constant 0 : i32
    %c0_i32_2 = arith.constant 0 : i32
    return %c0_i32, %c0_i32_0, %c0_i32_1 : i32, i32, i32
  }
  func.func @transform_6(%arg0: i32) -> (i32, i32, i32) {
    %c0_i32 = arith.constant 0 : i32
    %c0_i32_0 = arith.constant 0 : i32
    %c0_i32_1 = arith.constant 0 : i32
    return %arg0, %c0_i32, %c0_i32_0 : i32, i32, i32
  }
}

</mosaic_0001>

<bundles_post_ra>
// kernel: tpu_custom_call.1
= control target key start
LH: loop header
LB: loop body
LE: loop exit
PB: predicated region body
PF: predicated region fallthrough
CT: control target
= control target key end

     0   :  { %11 = vsyncpa [#allocation3], 0  ;;  %s4479_s0 = inlined_call_operand.vmem [shape: f32[2,1,8], index: 0, kind: input, shape index: {}]   ;;  %s4480_s1 = inlined_call_operand.vmem [shape: f32[2,8,1], index: 1, kind: input, shape index: {}]   ;;  %s4481_s2 = inlined_call_operand.vmem [shape: f32[2,8,256], index: 2, kind: input, shape index: {}]   ;;  %s4482_s3 = inlined_call_operand.hbm [shape: bf16[2,256,1024], index: 3, kind: input, shape index: {}]   ;;  %s4483_s4 = inlined_call_operand.hbm [shape: bf16[2,256,256], index: 4, kind: input, shape index: {}]   ;;  %s4484_s5 = inlined_call_operand.vmem [shape: f32[2,11,256], index: 5, kind: input, shape index: {}]   ;;  %s4485_s6 = inlined_call_operand.hbm [shape: f32[2,8,256], index: 6, kind: output, shape index: {}]  }
   0x1   :  { %12 = vsyncpa [#allocation6], 0 }
   0x2   :  { %13 = vsyncpa [#allocation4], 0 }
   0x3   :  { %15 = vsyncpa [#allocation4 + $0x1], 0  ;;  %s4043_s21 = smov 0   ;;  %s4045_s22 = smov 0  }
   0x4   :  { %s4047_s23 = smov 0   ;;  %s4049_s24 = smov 0  }
   0x5 LB: > { %s4064_s25 = sadd.s32 4294967295, %s3998_s24   ;;  %s3340_s26 = sadd.s32 4294967294, %s3998_s24   ;;  %s3998_s24 = sphi %s4049_s24, %s4503_s24   ;;  %s3994_s23 = sphi %s4047_s23, %s4502_s23   ;;  %s3990_s22 = sphi %s4045_s22, %s4501_s22   ;;  %s3986_s21 = sphi %s4043_s21, %s4500_s21  }
   0x6   : > { %s4068_s27 = sadd.s32 1, %s3998_s24   ;;  %s169_s28 = sadd.s32 1, %s3994_s23 }
   0x7   : > { %s166_s29 = ssub.s32 %s3998_s24, %s4068_s27  ;;  %p179_p0 = scmp.ne.s32.totalorder %s3994_s23, %s3990_s22 }
   0x8   : > { %p167_p1 = scmp.eq.s32.totalorder %s166_s29, 0  ;;  %p180_p2 = scmp.eq.s32.totalorder %s4064_s25, 1 }
   0x9   : > { %p185_p3 = scmp.ne.s32.totalorder %s3990_s22, %s3986_s21  ;;  %p186_p4 = scmp.eq.s32.totalorder %s3340_s26, 1 }
   0xa   : > { %s4079_s30 = scalar_select %p167_p1, %s3994_s23, %s169_s28  }
   0xb   : > { %p4081_p5 = por %p180_p2, %p179_p0  ;;  %p4085_p6 = por %p186_p4, %p185_p3 }
   0xc   : > { %p3341_p7 = scmp.ge.s32.totalorder %s3998_s24, 1  ;;  %p193_p8 = scmp.lt.s32.totalorder %s3998_s24, 3 }
   0xd   : > { %s4489_s7 = scalar_select %p4081_p5, 1, 0 }
   0xe   : > { %s4490_s8 = scalar_select %p4085_p6, 1, 0 }
   0xf   : > { %p4486_p9 = scmp.eq.s32.totalorder %s4064_s25, 0  ;;  %p4092_p10 = pnand %p3341_p7, %p193_p8 }
  0x10   : > { %s4000_s10 = smov [#allocation2]   ;;  %s4001_s13 = smov [#allocation5]  }
  0x11   : > { %s4491_s9 = scalar_select %p4092_p10, 1, 0 }
  0x12   : > { %s205_s11 = sshll.u32 %s4000_s10, 4  ;;  %p3698_p11 = pneg %p4092_p10  ;;  %s206_s11 = int_to_ptr.vmem [resolvable:$true] %s205_s11 }
  0x13   : > { %s218_s14 = sshll.u32 %s4001_s13, 4  ;;  %s3872_s17 = scalar_lea.hbm %s4482_s3, 32768  ;;  %s4104_s14 = int_to_ptr.vmem [resolvable:$true] %s218_s14 }
  0x14   : > { %p4100_p12 = pnand %p4486_p9, %p3698_p11  ;;  %p3873_p13 = scmp.ne.s32.totalorder %s4482_s3, %s3872_s17 }
  0x15   : > { %p3879_p3 = scmp.lt.u32.totalorder %s3872_s17, %s4482_s3 }
  0x16   : > { %p3874_p0 = pneg %p4100_p12 }
  0x18   : > { %p3875_p1 = pnand %p3874_p0, %p3873_p13 }
  0x1a   : > { %p3876_p2 = pneg %p3875_p1 }
  0x1c   : > { %p3881_p4 = pnand %p3879_p3, %p3876_p2 }
  0x1e   : > { %3884 = shalt.err (!%p3881_p4)
}
  0x1f   : > { %s3885_s28 = scalar_lea.vmem %s206_s11, 32768  ;;  %p3893_p9 = scmp.lt.s32.totalorder %s206_s11, %s206_s11 }
  0x20   : > { %p3886_p7 = scmp.ne.s32.totalorder %s206_s11, %s3885_s28  ;;  %p3894_p6 = scmp.lt.s32.totalorder %s3885_s28, %s3885_s28 }
  0x22   : > { %p3888_p8 = pnand %p3886_p7, %p3874_p0  ;;  %p3895_p5 = por %p3894_p6, %p3893_p9 }
  0x24   : > { %p3889_p11 = pneg %p3888_p8 }
  0x26   : > { %p3896_p10 = pnand %p3895_p5, %p3889_p11 }
  0x28   : > { %3899 = shalt.err (!%p3896_p10)
}
  0x29   : > { %s4002_s29 = smov 512   ;;  %s4003_s10 = smov 32  }
  0x2a   : > { %3701 = dma.hbm_to_vmem [thread:$0]  (!%p4100_p12), %s4482_s3, 32768, %s206_s11, [#allocation3], %s4002_s29, %s4002_s29, %s4003_s10  }
  0x2b   : > { %s3900_s18 = scalar_lea.hbm %s4483_s4, 8192 }
  0x2c   : > { %p3901_p13 = scmp.ne.s32.totalorder %s4483_s4, %s3900_s18  ;;  %p3907_p9 = scmp.lt.u32.totalorder %s3900_s18, %s4483_s4 }
  0x2e   : > { %p3903_p5 = pnand %p3901_p13, %p3874_p0 }
  0x30   : > { %p3904_p6 = pneg %p3903_p5 }
  0x32   : > { %p3909_p10 = pnand %p3907_p9, %p3904_p6 }
  0x34   : > { %3912 = shalt.err (!%p3909_p10)
}
  0x35   : > { %s3913_s11 = scalar_lea.vmem %s4104_s14, 8192  ;;  %p3921_p4 = scmp.lt.s32.totalorder %s4104_s14, %s4104_s14 }
  0x36   : > { %p3914_p1 = scmp.ne.s32.totalorder %s4104_s14, %s3913_s11  ;;  %p3922_p7 = scmp.lt.s32.totalorder %s3913_s11, %s3913_s11 }
  0x38   : > { %p3916_p2 = pnand %p3914_p1, %p3874_p0  ;;  %p3923_p8 = por %p3922_p7, %p3921_p4 }
  0x3a   : > { %p3917_p3 = pneg %p3916_p2 }
  0x3c   : > { %p3924_p11 = pnand %p3923_p8, %p3917_p3 }
  0x3e   : > { %3927 = shalt.err (!%p3924_p11)
}
  0x3f   : > { %s4004_s29 = smov 128   ;;  %s4005_s10 = smov 8  }
  0x40   : > { %3704 = dma.hbm_to_vmem [thread:$0]  (!%p4100_p12), %s4483_s4, 8192, %s4104_s14, [#allocation6], %s4004_s29, %s4004_s29, %s4005_s10  }
  0x41   : > { %p4493_p13 = scmp.ne.s32.totalorder %s4491_s9, 0 }
  0x42   : > { %p4494_p0 = scmp.eq.s32.totalorder (!%p4493_p13), %s4064_s25, 0 }
  0x43   : > { %258 = sbr.rel (%p4493_p13) target bundleno = 3809 (0xee1), region = 44 }
  0x4a   : > { %3973 = dma.done.wait (%p4494_p0), [#allocation3], 32768   ;;  %p4495_p5 = pmov %p4494_p0 }
  0x4b   : > { %p4496_p6 = pmov %p4494_p0 }
  0x4c   : > { %3975 = vsyncadd (%p4495_p5), [#allocation3], 4294934528 }
  0x4d   : > { %3977 = dma.done.wait (%p4496_p6), [#allocation6], 8192   ;;  %p4497_p9 = pmov %p4494_p0 }
  0x4e   : > { %v332_v0 = vld [vmem:[#allocation2 + $0x8] sm:$0xff]  ;;  %v331_v2 = vld [vmem:[#allocation2] sm:$0xff]  ;;  %p299_p12 = scmp.lt.s32.totalorder %s4064_s25, 1  ;;  %vm1403_vm0 = vcmask 1043456   ;;  %vm1385_vm1 = vcmask 64512   ;;  %s296_s14 = sand.u32 1, %s3990_s22  }
  0x4f   : > { %3979 = vsyncadd (%p4497_p9), [#allocation6], 4294959104  ;;  %v336_v1 = vld [vmem:[#allocation2 + $0x28] sm:$0xff]  ;;  %v335_v5 = vld [vmem:[#allocation2 + $0x20] sm:$0xff]  ;;  %s3348_s16 = sshll.u32 %s296_s14, 4  ;;  %p4498_p1 = scmp.ne.s32.totalorder %s4489_s7, 0 }
  0x50   : > { %v3356_v3 = vcombine.high %v332_v0, %v336_v1  ;;  %v3355_v4 = vcombine.low %v332_v0, %v336_v1  ;;  %v340_v6 = vld [vmem:[#allocation2 + $0x48] sm:$0xff]  ;;  %v3354_v8 = vcombine.high %v331_v2, %v335_v5  ;;  %v3353_v10 = vcombine.low %v331_v2, %v335_v5  ;;  %v339_v11 = vld [vmem:[#allocation2 + $0x40] sm:$0xff]  ;;  %s4165_s9 = scalar_select %p299_p12, %s4064_s25, 1 }
  0x51   : > { %v344_v7 = vld [vmem:[#allocation2 + $0x68] sm:$0xff]  ;;  %v343_v12 = vld [vmem:[#allocation2 + $0x60] sm:$0xff]  ;;  %s4007_s29 = smov [#allocation7]  }
  0x52   : > { %v3364_v9 = vcombine.high %v340_v6, %v344_v7  ;;  %v348_v13 = vld [vmem:[#allocation2 + $0x88] sm:$0xff]  ;;  %1178 = vmatprep.subr.bf16.mxu1 %v3356_v3  ;;  %v3362_v14 = vcombine.high %v339_v11, %v343_v12  ;;  %v347_v16 = vld [vmem:[#allocation2 + $0x80] sm:$0xff]  ;;  %1137 = vmatprep.subr.bf16.mxu0 %v3354_v8  ;;  %v3363_v18 = vcombine.low %v340_v6, %v344_v7  ;;  %s3686_s12 = sshll.u32 %s4165_s9, 4  ;;  %s3349_s18 = sshll.u32 %s4165_s9, 3 }
  0x53   : > { %v352_v15 = vld [vmem:[#allocation2 + $0xa8] sm:$0xff]  ;;  %v351_v17 = vld [vmem:[#allocation2 + $0xa0] sm:$0xff]  ;;  %1179 = vmatpush1.bf16.msra.mxu1 %v3355_v4  ;;  %1138 = vmatpush1.bf16.msra.mxu0 %v3353_v10  ;;  %v3361_v20 = vcombine.low %v339_v11, %v343_v12  ;;  %s4171_s17 = scalar_lea.vmem %s4481_s2, %s3686_s12  ;;  %s305_s26 = scalar_lea.vmem %s4480_s1, %s3349_s18 }
  0x54   : > { %1180 = vmatprep.subr.bf16.mxu1 %v3364_v9  ;;  %v3372_v19 = vcombine.high %v348_v13, %v352_v15  ;;  %1139 = vmatprep.subr.bf16.mxu0 %v3362_v14  ;;  %v3370_v21 = vcombine.high %v347_v16, %v351_v17  ;;  %v356_v22 = vld [vmem:[#allocation2 + $0xc8] sm:$0xff]  ;;  %v355_v24 = vld [vmem:[#allocation2 + $0xc0] sm:$0xff]  ;;  %v3371_v26 = vcombine.low %v348_v13, %v352_v15  ;;  %s301_s12 = scalar_lea.vmem %s4479_s0, %s4165_s9  ;;  %s298_s18 = scalar_lea.vmem [#allocation7], %s3348_s16 }
  0x55   : > { %v360_v23 = vld [vmem:[#allocation2 + $0xe8] sm:$0xff]  ;;  %v359_v25 = vld [vmem:[#allocation2 + $0xe0] sm:$0xff]  ;;  %v3369_v28 = vcombine.low %v347_v16, %v351_v17  ;;  %s3238_s19 = sshll.u32 %s298_s18, 4  ;;  %s3932_s10 = sshll.u32 %s4007_s29, 4  ;;  %s4437_s19 = int_to_ptr.vmem [resolvable:$true] %s3238_s19  ;;  %s3933_s10 = int_to_ptr.vmem [resolvable:$false] %s3932_s10 }
  0x56   : > { %v3380_v27 = vcombine.high %v356_v22, %v360_v23  ;;  %v3378_v29 = vcombine.high %v355_v24, %v359_v25  ;;  %v364_v30 = vld [vmem:[#allocation2 + $0x108] sm:$0xff]  ;;  %v363_v32 = vld [vmem:[#allocation2 + $0x100] sm:$0xff]  ;;  %v3379_v34 = vcombine.low %v356_v22, %v360_v23  ;;  %v3377_v36 = vcombine.low %v355_v24, %v359_v25  ;;  %s3928_s11 = scalar_lea.vmem %s4437_s19, 256  ;;  %s3934_s13 = scalar_lea.vmem %s3933_s10, 512 }
  0x57   : > { %1181 = vmatpush1.bf16.msra.mxu1 %v3363_v18  ;;  %1140 = vmatpush1.bf16.msra.mxu0 %v3361_v20  ;;  %v368_v31 = vld [vmem:[#allocation2 + $0x128] sm:$0xff]  ;;  %v367_v33 = vld [vmem:[#allocation2 + $0x120] sm:$0xff]  ;;  %p3929_p10 = scmp.ne.s32.totalorder %s4437_s19, %s3928_s11  ;;  %p3935_p4 = scmp.lt.s32.totalorder %s4437_s19, %s3933_s10 }
  0x58   : > { %1182 = vmatprep.subr.bf16.mxu1 %v3372_v19  ;;  %1141 = vmatprep.subr.bf16.mxu0 %v3370_v21  ;;  %v3388_v35 = vcombine.high %v364_v30, %v368_v31  ;;  %v3386_v37 = vcombine.high %v363_v32, %v367_v33  ;;  %v372_v38 = vld [vmem:[#allocation2 + $0x148] sm:$0xff]  ;;  %v371_v40 = vld [vmem:[#allocation2 + $0x140] sm:$0xff]  ;;  %v3387_v42 = vcombine.low %v364_v30, %v368_v31  ;;  %p3936_p7 = scmp.lt.s32.totalorder %s3934_s13, %s3928_s11 }
  0x59   : > { %v376_v39 = vld [vmem:[#allocation2 + $0x168] sm:$0xff]  ;;  %v375_v41 = vld [vmem:[#allocation2 + $0x160] sm:$0xff]  ;;  %v3385_v44 = vcombine.low %v363_v32, %v367_v33  ;;  %p3930_p2 = pnand %p3929_p10, %p4498_p1 }
  0x5a   : > { %v3396_v43 = vcombine.high %v372_v38, %v376_v39  ;;  %v3394_v45 = vcombine.high %v371_v40, %v375_v41  ;;  %v380_v46 = vld [vmem:[#allocation2 + $0x188] sm:$0xff]  ;;  %v379_v48 = vld [vmem:[#allocation2 + $0x180] sm:$0xff]  ;;  %v3395_v50 = vcombine.low %v372_v38, %v376_v39  ;;  %v3393_v53 = vcombine.low %v371_v40, %v375_v41  ;;  %p3937_p8 = por %p3936_p7, %p3935_p4 }
  0x5b   : > { %1183 = vmatpush1.bf16.msra.mxu1 %v3371_v26  ;;  %1142 = vmatpush1.bf16.msra.mxu0 %v3369_v28  ;;  %v384_v47 = vld [vmem:[#allocation2 + $0x1a8] sm:$0xff]  ;;  %v383_v49 = vld [vmem:[#allocation2 + $0x1a0] sm:$0xff]  ;;  %p3931_p3 = pneg %p3930_p2 }
  0x5c   : > { %1184 = vmatprep.subr.bf16.mxu1 %v3380_v27  ;;  %1143 = vmatprep.subr.bf16.mxu0 %v3378_v29  ;;  %v330_v51 = vld [vmem:[%s4171_s17 + $0x8] sm:$0xff]  ;;  %v3404_v52 = vcombine.high %v380_v46, %v384_v47  ;;  %v3402_v55 = vcombine.high %v379_v48, %v383_v49  ;;  %v387_v58 = vld [vmem:[#allocation2 + $0x1c0] sm:$0xff]  ;;  %v3403_v60 = vcombine.low %v380_v46, %v384_v47 }
  0x5d   : > { %v4174_v54 = vpack.c.bf16 %v330_v51, %v330_v51  ;;  %v388_v56 = vld [vmem:[#allocation2 + $0x1c8] sm:$0xff]  ;;  %v391_v59 = vld [vmem:[#allocation2 + $0x1e0] sm:$0xff]  ;;  %v3401_v62 = vcombine.low %v379_v48, %v383_v49  ;;  %p3938_p11 = pnand %p3937_p8, %p3931_p3 }
  0x5e   : > { %v392_v57 = vld [vmem:[#allocation2 + $0x1e8] sm:$0xff]  ;;  %v3410_v63 = vcombine.high %v387_v58, %v391_v59  ;;  %v395_v2 = vld [vmem:[#allocation2 + $0x200] sm:$0xff]  ;;  %v3409_v6 = vcombine.low %v387_v58, %v391_v59 }
  0x5f   : > { %1185 = vmatpush1.bf16.msra.mxu1 %v3379_v34  ;;  %1144 = vmatpush1.bf16.msra.mxu0 %v3377_v36  ;;  %v3412_v61 = vcombine.high %v388_v56, %v392_v57  ;;  %v396_v0 = vld [vmem:[#allocation2 + $0x208] sm:$0xff]  ;;  %v399_v3 = vld [vmem:[#allocation2 + $0x220] sm:$0xff]  ;;  %v3411_v4 = vcombine.low %v388_v56, %v392_v57 }
  0x60   : > { %1186 = vmatprep.subr.bf16.mxu1 %v3388_v35  ;;  %1145 = vmatprep.subr.bf16.mxu0 %v3386_v37  ;;  %v400_v1 = vld [vmem:[#allocation2 + $0x228] sm:$0xff]  ;;  %v3418_v7 = vcombine.high %v395_v2, %v399_v3  ;;  %v403_v10 = vld [vmem:[#allocation2 + $0x240] sm:$0xff]  ;;  %v3417_v16 = vcombine.low %v395_v2, %v399_v3  ;;  %v337_v2 = vld [vmem:[#allocation2 + $0x30] sm:$0xff] }
  0x61   : > { %1210 = vmatprep.mubr.bf16.mxu1 %v4174_v54  ;;  %1169 = vmatprep.mubr.bf16.mxu0 %v4174_v54  ;;  %v3420_v5 = vcombine.high %v396_v0, %v400_v1  ;;  %v404_v8 = vld [vmem:[#allocation2 + $0x248] sm:$0xff]  ;;  %v407_v11 = vld [vmem:[#allocation2 + $0x260] sm:$0xff]  ;;  %v3419_v12 = vcombine.low %v396_v0, %v400_v1  ;;  %v333_v1 = vld [vmem:[#allocation2 + $0x10] sm:$0xff] }
  0x62   : > { %v408_v9 = vld [vmem:[#allocation2 + $0x268] sm:$0xff]  ;;  %v411_v17 = vld [vmem:[#allocation2 + $0x280] sm:$0xff]  ;;  %v3426_v19 = vcombine.high %v403_v10, %v407_v11  ;;  %v3425_v24 = vcombine.low %v403_v10, %v407_v11  ;;  %v3357_v10 = vcombine.low %v333_v1, %v337_v2 }
  0x63   : > { %1187 = vmatpush1.bf16.msra.mxu1 %v3387_v42  ;;  %1146 = vmatpush1.bf16.msra.mxu0 %v3385_v44  ;;  %v412_v13 = vld [vmem:[#allocation2 + $0x288] sm:$0xff]  ;;  %v3428_v15 = vcombine.high %v404_v8, %v408_v9  ;;  %v415_v18 = vld [vmem:[#allocation2 + $0x2a0] sm:$0xff]  ;;  %v3427_v20 = vcombine.low %v404_v8, %v408_v9  ;;  %v341_v8 = vld [vmem:[#allocation2 + $0x50] sm:$0xff] }
  0x64   : > { %1188 = vmatprep.subr.bf16.mxu1 %v3396_v43  ;;  %1147 = vmatprep.subr.bf16.mxu0 %v3394_v45  ;;  %v416_v14 = vld [vmem:[#allocation2 + $0x2a8] sm:$0xff]  ;;  %v419_v25 = vld [vmem:[#allocation2 + $0x2c0] sm:$0xff]  ;;  %v3434_v27 = vcombine.high %v411_v17, %v415_v18  ;;  %v3433_v32 = vcombine.low %v411_v17, %v415_v18  ;;  %v345_v9 = vld [vmem:[#allocation2 + $0x70] sm:$0xff] }
  0x65   : > { %v420_v21 = vld [vmem:[#allocation2 + $0x2c8] sm:$0xff]  ;;  %v3436_v23 = vcombine.high %v412_v13, %v416_v14  ;;  %v423_v26 = vld [vmem:[#allocation2 + $0x2e0] sm:$0xff]  ;;  %v3435_v28 = vcombine.low %v412_v13, %v416_v14  ;;  %v3366_v11 = vcombine.high %v341_v8, %v345_v9  ;;  %v353_v13 = vld [vmem:[#allocation2 + $0xb0] sm:$0xff]  ;;  %v3365_v14 = vcombine.low %v341_v8, %v345_v9 }
  0x66   : > { %v424_v22 = vld [vmem:[#allocation2 + $0x2e8] sm:$0xff]  ;;  %v427_v33 = vld [vmem:[#allocation2 + $0x300] sm:$0xff]  ;;  %v3442_v35 = vcombine.high %v419_v25, %v423_v26  ;;  %v3441_v40 = vcombine.low %v419_v25, %v423_v26  ;;  %v361_v17 = vld [vmem:[#allocation2 + $0xf0] sm:$0xff]  ;;  %v1301_v8 = vlaneseq }
  0x67   : > { %1189 = vmatpush1.bf16.msra.mxu1 %v3395_v50  ;;  %1148 = vmatpush1.bf16.msra.mxu0 %v3393_v53  ;;  %v428_v29 = vld [vmem:[#allocation2 + $0x308] sm:$0xff]  ;;  %v3444_v31 = vcombine.high %v420_v21, %v424_v22  ;;  %v431_v34 = vld [vmem:[#allocation2 + $0x320] sm:$0xff]  ;;  %v3443_v36 = vcombine.low %v420_v21, %v424_v22  ;;  %v369_v21 = vld [vmem:[#allocation2 + $0x130] sm:$0xff] }
  0x68   : > { %1190 = vmatprep.subr.bf16.mxu1 %v3404_v52  ;;  %1149 = vmatprep.subr.bf16.mxu0 %v3402_v55  ;;  %v432_v30 = vld [vmem:[#allocation2 + $0x328] sm:$0xff]  ;;  %v435_v41 = vld [vmem:[#allocation2 + $0x340] sm:$0xff]  ;;  %v3450_v43 = vcombine.high %v427_v33, %v431_v34  ;;  %v3449_v48 = vcombine.low %v427_v33, %v431_v34  ;;  %v377_v25 = vld [vmem:[#allocation2 + $0x170] sm:$0xff]  ;;  %v4191_v9 = vshrl.u32 %v1301_v8, 7 }
  0x69   : > { %v436_v37 = vld [vmem:[#allocation2 + $0x348] sm:$0xff]  ;;  %v3452_v39 = vcombine.high %v428_v29, %v432_v30  ;;  %v439_v42 = vld [vmem:[#allocation2 + $0x360] sm:$0xff]  ;;  %v3451_v44 = vcombine.low %v428_v29, %v432_v30 }
  0x6a   : > { %v440_v38 = vld [vmem:[#allocation2 + $0x368] sm:$0xff]  ;;  %v443_v49 = vld [vmem:[#allocation2 + $0x380] sm:$0xff]  ;;  %v3458_v51 = vcombine.high %v435_v41, %v439_v42  ;;  %v3457_v55 = vcombine.low %v435_v41, %v439_v42 }
  0x6b   : > { %1191 = vmatpush1.bf16.msra.mxu1 %v3403_v60  ;;  %1150 = vmatpush1.bf16.msra.mxu0 %v3401_v62  ;;  %v444_v45 = vld [vmem:[#allocation2 + $0x388] sm:$0xff]  ;;  %v3460_v47 = vcombine.high %v436_v37, %v440_v38  ;;  %v447_v50 = vld [vmem:[#allocation2 + $0x3a0] sm:$0xff]  ;;  %v3459_v52 = vcombine.low %v436_v37, %v440_v38 }
  0x6c   : > { %1192 = vmatprep.subr.bf16.mxu1 %v3412_v61  ;;  %1151 = vmatprep.subr.bf16.mxu0 %v3410_v63  ;;  %v448_v46 = vld [vmem:[#allocation2 + $0x3a8] sm:$0xff]  ;;  %v3466_v56 = vcombine.high %v443_v49, %v447_v50  ;;  %v451_v59 = vld [vmem:[#allocation2 + $0x3c0] sm:$0xff]  ;;  %v3465_v63 = vcombine.low %v443_v49, %v447_v50 }
  0x6d   : > { %v3468_v53 = vcombine.high %v444_v45, %v448_v46  ;;  %v452_v57 = vld [vmem:[#allocation2 + $0x3c8] sm:$0xff]  ;;  %v455_v60 = vld [vmem:[#allocation2 + $0x3e0] sm:$0xff]  ;;  %v3467_v61 = vcombine.low %v444_v45, %v448_v46 }
  0x6e   : > { %v456_v58 = vld [vmem:[#allocation2 + $0x3e8] sm:$0xff]  ;;  %v3474_v0 = vcombine.high %v451_v59, %v455_v60 }
  0x6f   : > { %1193 = vmatpush1.bf16.msra.mxu1 %v3411_v4  ;;  %1152 = vmatpush1.bf16.msra.mxu0 %v3409_v6  ;;  %v3476_v62 = vcombine.high %v452_v57, %v456_v58  ;;  %v3475_v3 = vcombine.low %v452_v57, %v456_v58  ;;  %v329_v4 = vld [vmem:[%s4171_s17] sm:$0xff]  ;;  %v3358_v6 = vcombine.high %v333_v1, %v337_v2  ;;  %v441_v57 = vld [vmem:[#allocation2 + $0x370] sm:$0xff]  ;;  %s3687_s17 = sshll.u32 %s4064_s25, 8  ;;  %s3224_s25 = scalar_lea.sflag [#allocation4], %s296_s14 }
  0x70   : > { %1194 = vmatprep.subr.bf16.mxu1 %v3420_v5  ;;  %1153 = vmatprep.subr.bf16.mxu0 %v3418_v7  ;;  %v3473_v5 = vcombine.low %v451_v59, %v455_v60  ;;  %v4179_v7 = vpack.c.bf16 %v329_v4, %v329_v4  ;;  %v445_v60 = vld [vmem:[#allocation2 + $0x390] sm:$0xff]  ;;  %s4435_s28 = scalar_lea.hbm %s4485_s6, %s3687_s17 }
  0x71   : > { %v457_v1 = vld [vmem:[#allocation2 + $0x3f0] sm:$0xff] }
  0x73   : > { %1195 = vmatpush1.bf16.msra.mxu1 %v3419_v12  ;;  %1154 = vmatpush1.bf16.msra.mxu0 %v3417_v16  ;;  %v349_v12 = vld [vmem:[#allocation2 + $0x90] sm:$0xff] }
  0x74   : > { %1196 = vmatprep.subr.bf16.mxu1 %v3428_v15  ;;  %1155 = vmatprep.subr.bf16.mxu0 %v3426_v19  ;;  %v3374_v15 = vcombine.high %v349_v12, %v353_v13  ;;  %v357_v16 = vld [vmem:[#allocation2 + $0xd0] sm:$0xff]  ;;  %v3373_v18 = vcombine.low %v349_v12, %v353_v13  ;;  %v4204_v12 = vld [vmem:[%s4484_s5 + $0x8] sm:$0xff]  ;;  %v4207_v13 = vsub.s32 0, %v4191_v9 }
  0x75   : > { %v3382_v19 = vcombine.high %v357_v16, %v361_v17  ;;  %v3381_v22 = vcombine.low %v357_v16, %v361_v17 }
  0x76   : > { %v1308_v16 = vrot.slane %v4204_v12, %v4207_v13 }
  0x77   : > { %1197 = vmatpush1.bf16.msra.mxu1 %v3427_v20  ;;  %1156 = vmatpush1.bf16.msra.mxu0 %v3425_v24  ;;  %v365_v20 = vld [vmem:[#allocation2 + $0x110] sm:$0xff] }
  0x78   : > { %1198 = vmatprep.subr.bf16.mxu1 %v3436_v23  ;;  %1157 = vmatprep.subr.bf16.mxu0 %v3434_v27  ;;  %v3390_v23 = vcombine.high %v365_v20, %v369_v21  ;;  %v373_v24 = vld [vmem:[#allocation2 + $0x150] sm:$0xff]  ;;  %v3389_v26 = vcombine.low %v365_v20, %v369_v21 }
  0x79   : > { %v381_v27 = vld [vmem:[#allocation2 + $0x190] sm:$0xff]  ;;  %v3397_v29 = vcombine.low %v373_v24, %v377_v25 }
  0x7b   : > { %1199 = vmatpush1.bf16.msra.mxu1 %v3435_v28  ;;  %1158 = vmatpush1.bf16.msra.mxu0 %v3433_v32  ;;  %v385_v28 = vld [vmem:[#allocation2 + $0x1b0] sm:$0xff] }
  0x7c   : > { %1200 = vmatprep.subr.bf16.mxu1 %v3444_v31  ;;  %1159 = vmatprep.subr.bf16.mxu0 %v3442_v35  ;;  %v3406_v30 = vcombine.high %v381_v27, %v385_v28  ;;  %v389_v31 = vld [vmem:[#allocation2 + $0x1d0] sm:$0xff]  ;;  %v3405_v33 = vcombine.low %v381_v27, %v385_v28 }
  0x7d   : > { %v393_v32 = vld [vmem:[#allocation2 + $0x1f0] sm:$0xff] }
  0x7e   : > { %v3414_v34 = vcombine.high %v389_v31, %v393_v32  ;;  %v397_v35 = vld [vmem:[#allocation2 + $0x210] sm:$0xff]  ;;  %v3413_v37 = vcombine.low %v389_v31, %v393_v32 }
  0x7f   : > { %1201 = vmatpush1.bf16.msra.mxu1 %v3443_v36  ;;  %1160 = vmatpush1.bf16.msra.mxu0 %v3441_v40  ;;  %v401_v36 = vld [vmem:[#allocation2 + $0x230] sm:$0xff] }
  0x80   : > { %1202 = vmatprep.subr.bf16.mxu1 %v3452_v39  ;;  %1161 = vmatprep.subr.bf16.mxu0 %v3450_v43  ;;  %v3422_v38 = vcombine.high %v397_v35, %v401_v36  ;;  %v405_v39 = vld [vmem:[#allocation2 + $0x250] sm:$0xff]  ;;  %v3421_v41 = vcombine.low %v397_v35, %v401_v36 }
  0x81   : > { %v409_v40 = vld [vmem:[#allocation2 + $0x270] sm:$0xff] }
  0x82   : > { %v3430_v42 = vcombine.high %v405_v39, %v409_v40  ;;  %v413_v43 = vld [vmem:[#allocation2 + $0x290] sm:$0xff]  ;;  %v3429_v45 = vcombine.low %v405_v39, %v409_v40 }
  0x83   : > { %1203 = vmatpush1.bf16.msra.mxu1 %v3451_v44  ;;  %1162 = vmatpush1.bf16.msra.mxu0 %v3449_v48  ;;  %v417_v44 = vld [vmem:[#allocation2 + $0x2b0] sm:$0xff] }
  0x84   : > { %1204 = vmatprep.subr.bf16.mxu1 %v3460_v47  ;;  %1163 = vmatprep.subr.bf16.mxu0 %v3458_v51  ;;  %v3438_v46 = vcombine.high %v413_v43, %v417_v44  ;;  %v421_v47 = vld [vmem:[#allocation2 + $0x2d0] sm:$0xff]  ;;  %v3437_v49 = vcombine.low %v413_v43, %v417_v44 }
  0x85   : > { %v425_v48 = vld [vmem:[#allocation2 + $0x2f0] sm:$0xff] }
  0x86   : > { %v3446_v50 = vcombine.high %v421_v47, %v425_v48  ;;  %v429_v51 = vld [vmem:[#allocation2 + $0x310] sm:$0xff] }
  0x87   : > { %1205 = vmatpush1.bf16.msra.mxu1 %v3459_v52  ;;  %1164 = vmatpush1.bf16.msra.mxu0 %v3457_v55  ;;  %v433_v52 = vld [vmem:[#allocation2 + $0x330] sm:$0xff] }
  0x88   : > { %1206 = vmatprep.subr.bf16.mxu1 %v3468_v53  ;;  %1165 = vmatprep.subr.bf16.mxu0 %v3466_v56  ;;  %v3445_v53 = vcombine.low %v421_v47, %v425_v48  ;;  %v3454_v55 = vcombine.high %v429_v51, %v433_v52  ;;  %v437_v56 = vld [vmem:[#allocation2 + $0x350] sm:$0xff]  ;;  %v3453_v58 = vcombine.low %v429_v51, %v433_v52 }
  0x89   : > { %v3462_v59 = vcombine.high %v437_v56, %v441_v57 }
  0x8b   : > { %1207 = vmatpush1.bf16.msra.mxu1 %v3467_v61  ;;  %1166 = vmatpush1.bf16.msra.mxu0 %v3465_v63  ;;  %v449_v61 = vld [vmem:[#allocation2 + $0x3b0] sm:$0xff] }
  0x8c   : > { %1208 = vmatprep.subr.bf16.mxu1 %v3476_v62  ;;  %1167 = vmatprep.subr.bf16.mxu0 %v3474_v0  ;;  %v3461_v62 = vcombine.low %v437_v56, %v441_v57  ;;  %v3470_v63 = vcombine.high %v445_v60, %v449_v61  ;;  %v453_v0 = vld [vmem:[#allocation2 + $0x3d0] sm:$0xff]  ;;  %v3469_v2 = vcombine.low %v445_v60, %v449_v61 }
  0x8d   : > { %v3477_v4 = vcombine.low %v453_v0, %v457_v1 }
  0x8f   : > { %1209 = vmatpush1.bf16.msra.mxu1 %v3475_v3  ;;  %1168 = vmatpush1.bf16.msra.mxu0 %v3473_v5  ;;  %v3478_v3 = vcombine.high %v453_v0, %v457_v1  ;;  %v4006_v5 = vmov 0  }
  0x90   : > { %1219 = vmatprep.subr.bf16.mxu0 %v3358_v6  ;;  %3753 = vset.pattern.permute.xlu0 %v4006_v5  ;;  %v312_v6 = vld [vmem:[%s305_s26] sm:$0xff] }
  0x91   : > { %316 = vperm.xlu0 %3753, %v312_v6  }
  0x92   : > { %1211 = vmatmul.mubr.bf16.vlgmr.msra.gmra.mrb[0].mxu1 %v4179_v7  ;;  %1170 = vmatmul.mubr.bf16.vlgmr.msra.gmra.mrb[0].mxu0 %v4179_v7 }
  0x93   : > { %1292 = vmatprep.mubr.bf16.mxu1 %v4174_v54  ;;  %1220 = vmatpush1.bf16.msra.mxu0 %v3357_v10  ;;  %v4194_v10 = vsub.s32 1, %v4191_v9 }
  0x94   : > { %1251 = vmatprep.mubr.bf16.mxu0 %v4174_v54  ;;  %1221 = vmatprep.subr.bf16.mxu0 %v3366_v11  ;;  %v3398_v54 = vcombine.high %v373_v24, %v377_v25  ;;  %v4199_v11 = vld [vmem:[%s4484_s5] sm:$0xff] }
  0x95   : > { %v1304_v27 = vrot.slane %v4199_v11, %v4207_v13 }
  0x97   : > { %1222 = vmatpush1.bf16.msra.mxu0 %v3365_v14  ;;  %v1314_v14 = vrot.slane %v4199_v11, %v4194_v10 }
  0x98   : > { %1223 = vmatprep.subr.bf16.mxu0 %v3374_v15  ;;  %v1318_v15 = vrot.slane %v4204_v12, %v4194_v10 }
  0x9b   : > { %1224 = vmatpush1.bf16.msra.mxu0 %v3373_v18 }
  0x9c   : > { %1225 = vmatprep.subr.bf16.mxu0 %v3382_v19 }
  0x9f   : > { %1226 = vmatpush1.bf16.msra.mxu0 %v3381_v22 }
  0xa0   : > { %1227 = vmatprep.subr.bf16.mxu0 %v3390_v23 }
  0xa3   : > { %1228 = vmatpush1.bf16.msra.mxu0 %v3389_v26 }
  0xa4   : > { %1229 = vmatprep.subr.bf16.mxu0 %v3398_v54 }
  0xa7   : > { %1230 = vmatpush1.bf16.msra.mxu0 %v3397_v29 }
  0xa8   : > { %1231 = vmatprep.subr.bf16.mxu0 %v3406_v30 }
  0xab   : > { %1232 = vmatpush1.bf16.msra.mxu0 %v3405_v33  ;;  %v4219_v33 = vsub.s32 2, %v4191_v9 }
  0xac   : > { %1233 = vmatprep.subr.bf16.mxu0 %v3414_v34 }
  0xad   : > { %v1324_v34 = vrot.slane %v4199_v11, %v4219_v33  ;;  %v1328_v35 = vrot.slane %v4204_v12, %v4219_v33 }
  0xaf   : > { %1234 = vmatpush1.bf16.msra.mxu0 %v3413_v37 }
  0xb0   : > { %1235 = vmatprep.subr.bf16.mxu0 %v3422_v38 }
  0xb3   : > { %1236 = vmatpush1.bf16.msra.mxu0 %v3421_v41 }
  0xb4   : > { %1237 = vmatprep.subr.bf16.mxu0 %v3430_v42 }
  0xb7   : > { %1238 = vmatpush1.bf16.msra.mxu0 %v3429_v45  ;;  %v3352_v45 = vld [vmem:[%s301_s12] ss:$0 sm:$0xff] }
  0xb8   : > { %1239 = vmatprep.subr.bf16.mxu0 %v3438_v46 }
  0xbb   : > { %1240 = vmatpush1.bf16.msra.mxu0 %v3437_v49 }
  0xbc   : > { %1241 = vmatprep.subr.bf16.mxu0 %v3446_v50 }
  0xbf   : > { %1242 = vmatpush1.bf16.msra.mxu0 %v3445_v53 }
  0xc0   : > { %1243 = vmatprep.subr.bf16.mxu0 %v3454_v55 }
  0xc3   : > { %1244 = vmatpush1.bf16.msra.mxu0 %v3453_v58 }
  0xc4   : > { %1245 = vmatprep.subr.bf16.mxu0 %v3462_v59 }
  0xc7   : > { %1246 = vmatpush1.bf16.msra.mxu0 %v3461_v62 }
  0xc8   : > { %1247 = vmatprep.subr.bf16.mxu0 %v3470_v63 }
  0xcb   : > { %1248 = vmatpush1.bf16.msra.mxu0 %v3469_v2 }
  0xcc   : > { %1249 = vmatprep.subr.bf16.mxu0 %v3478_v3 }
  0xcf   : > { %1250 = vmatpush1.bf16.msra.mxu0 %v3477_v4 }
  0xd2   : > { %1252 = vmatmul.mubr.bf16.vlgmr.msra.gmra.mrb[4].mxu0 %v4179_v7 }
 0x110   : > { %v317_v46 = vpop.permute.xlu0 %316 }
 0x111   : > { %v325_v47 = vmul.f32 %v3352_v45, %v317_v46  ;;  %v378_v45 = vld [vmem:[#allocation2 + $0x178] sm:$0xff] }
 0x112   : > { %v3771_v46 = vld [vmem:[#allocation5 + $0x54] ss:$8 sps:$4 sm:$0xff]  }
 0x113   : > { %v326_v48 = vsub.f32 1.0, %v325_v47 }
 0x115   : > { %v327_v49 = vmul.f32 100000.0, %v326_v48 }
 0x117   : > { %v4231_v50 = vsub.f32 %v325_v47, %v327_v49  ;;  %v3769_v49 = vld [vmem:[#allocation5 + $0x50] ss:$8 sps:$4 sm:$0xff]  }
 0x165   : > { %v1212_v17 = vpop.f32.mrb[0].mxu1  ;;  %v1171_v20 = vpop.f32.mrb[0].mxu0 }
 0x166   : > { %v1319_v18 = vadd.f32 %v1314_v14, %v1212_v17  ;;  %v1214_v19 = vpop.f32.mrb[1].mxu1  ;;  %v1173_v23 = vpop.f32.mrb[1].mxu0  ;;  %v1309_v31 = vadd.f32 %v1304_v27, %v1171_v20  ;;  %v334_v17 = vld [vmem:[#allocation2 + $0x18] sm:$0xff]  ;;  %v3762_v27 = vld [vmem:[#allocation5 + $0x24] ss:$8 sps:$4 sm:$0xff]  }
 0x167   : > { %v1320_v21 = vadd.f32 %v1318_v15, %v1214_v19  ;;  %v1216_v22 = vpop.f32.mrb[2].mxu1  ;;  %v1310_v25 = vadd.f32 %v1308_v16, %v1173_v23  ;;  %v1175_v26 = vpop.f32.mrb[2].mxu0  ;;  %v3754_v15 = vld [vmem:[#allocation5] ss:$8 sps:$4 sm:$0xff]   ;;  %v3756_v16 = vld [vmem:[#allocation5 + $0x4] ss:$8 sps:$4 sm:$0xff]  }
 0x168   : > { %v1217_v24 = vpop.f32.mrb[3].mxu1  ;;  %v1176_v28 = vpop.f32.mrb[3].mxu0  ;;  %v1343_v29 = vpack.c.bf16 %v1319_v18, %v1319_v18  ;;  %v1341_v32 = vpack.c.bf16 %v1309_v31, %v1309_v31  ;;  %v338_v18 = vld [vmem:[#allocation2 + $0x38] sm:$0xff] }
 0x169   : > { %v1344_v54 = vpack.c.bf16 %v1320_v21, %v1320_v21  ;;  %v1342_v30 = vpack.c.bf16 %v1310_v25, %v1310_v25  ;;  %v3759_v19 = vld [vmem:[#allocation5 + $0x14] ss:$8 sps:$4 sm:$0xff]   ;;  %v3359_v20 = vcombine.low %v334_v17, %v338_v18  ;;  %v3360_v21 = vcombine.high %v334_v17, %v338_v18  ;;  %v3757_v24 = vld [vmem:[#allocation5 + $0x10] ss:$8 sps:$4 sm:$0xff]  }
 0x16a   : > { %v342_v22 = vld [vmem:[#allocation2 + $0x58] sm:$0xff] }
 0x16b   : > { %1345 = vmatprep.subr.bf16.mxu0 %v1344_v54  ;;  %1377 = vmatprep.mubr.bf16.mxu0 %v1342_v30  ;;  %v346_v23 = vld [vmem:[#allocation2 + $0x78] sm:$0xff]  ;;  %v3760_v30 = vld [vmem:[#allocation5 + $0x20] ss:$8 sps:$4 sm:$0xff]  }
 0x16c   : > { %1346 = vmatpush1.bf16.xpose.msra.mxu0 %v1343_v29  ;;  %v3368_v25 = vcombine.high %v342_v22, %v346_v23  ;;  %v350_v26 = vld [vmem:[#allocation2 + $0x98] sm:$0xff]  ;;  %1260 = vmatprep.subr.bf16.mxu1 %v3360_v21  ;;  %v3367_v28 = vcombine.low %v342_v22, %v346_v23 }
 0x16d   : > { %v354_v54 = vld [vmem:[#allocation2 + $0xb8] sm:$0xff]  ;;  %1261 = vmatpush1.bf16.msra.mxu1 %v3359_v20 }
 0x16e   : > { %1262 = vmatprep.subr.bf16.mxu1 %v3368_v25  ;;  %v3376_v29 = vcombine.high %v350_v26, %v354_v54  ;;  %v358_v31 = vld [vmem:[#allocation2 + $0xd8] sm:$0xff] }
 0x16f   : > { %v3783_v17 = vld [vmem:[#allocation5 + $0x94] ss:$8 sps:$4 sm:$0xff]   ;;  %v3781_v20 = vld [vmem:[#allocation5 + $0x90] ss:$8 sps:$4 sm:$0xff]  }
 0x171   : > { %1263 = vmatpush1.bf16.msra.mxu1 %v3367_v28  ;;  %v3786_v28 = vld [vmem:[#allocation5 + $0xa4] ss:$8 sps:$4 sm:$0xff]  }
 0x172   : > { %1264 = vmatprep.subr.bf16.mxu1 %v3376_v29  ;;  %v414_v29 = vld [vmem:[#allocation2 + $0x298] sm:$0xff] }
 0x173   : > { %1378 = vmatmul.mubr.bf16.vlgmr.msra.gmra.mrb[8].mxu0 %v1341_v32  ;;  %v362_v32 = vld [vmem:[#allocation2 + $0xf8] sm:$0xff] }
 0x174   : > { %1442 = vmatprep.mubr.bf16.mxu0 %v4006_v5 }
 0x1a5   : > { %v1253_v36 = vpop.f32.mrb[4].mxu0 }
 0x1a6   : > { %v1329_v37 = vadd.f32 %v1324_v34, %v1253_v36  ;;  %v1255_v38 = vpop.f32.mrb[5].mxu0  ;;  %v3765_v34 = vld [vmem:[#allocation5 + $0x34] ss:$8 sps:$4 sm:$0xff]   ;;  %v3384_v36 = vcombine.high %v358_v31, %v362_v32 }
 0x1a7   : > { %v1330_v39 = vadd.f32 %v1328_v35, %v1255_v38  ;;  %v1257_v40 = vpop.f32.mrb[6].mxu0  ;;  %v3375_v35 = vcombine.low %v350_v26, %v354_v54  ;;  %v366_v38 = vld [vmem:[#allocation2 + $0x118] sm:$0xff] }
 0x1a8   : > { %v1398_v41 = vpack.c.bf16 %v1329_v37, %v1329_v37  ;;  %v1258_v42 = vpop.f32.mrb[7].mxu0  ;;  %v3763_v37 = vld [vmem:[#allocation5 + $0x30] ss:$8 sps:$4 sm:$0xff]   ;;  %v3768_v40 = vld [vmem:[#allocation5 + $0x44] ss:$8 sps:$4 sm:$0xff]  }
 0x1a9   : > { %v1399_v43 = vpack.c.bf16 %v1330_v39, %v1330_v39  ;;  %v370_v39 = vld [vmem:[#allocation2 + $0x138] sm:$0xff]  ;;  %1265 = vmatpush1.bf16.msra.mxu1 %v3375_v35 }
 0x1aa   : > { %v1405_v44 = vsel %vm1403_vm0, %v1398_v41, 0  ;;  %v3383_v41 = vcombine.low %v358_v31, %v362_v32  ;;  %1266 = vmatprep.subr.bf16.mxu1 %v3384_v36  ;;  %v3392_v42 = vcombine.high %v366_v38, %v370_v39  ;;  %v3391_v47 = vcombine.low %v366_v38, %v370_v39  ;;  %v3784_v31 = vld [vmem:[#allocation5 + $0xa0] ss:$8 sps:$4 sm:$0xff]   ;;  %v422_v35 = vld [vmem:[#allocation2 + $0x2d8] sm:$0xff] }
 0x1ab   : > { %3481 = vmatprep.subr.msk.bf16.mxu0 %vm1403_vm0, %v1399_v43  ;;  %v3766_v43 = vld [vmem:[#allocation5 + $0x40] ss:$8 sps:$4 sm:$0xff]   ;;  %v426_v36 = vld [vmem:[#allocation2 + $0x2f8] sm:$0xff] }
 0x1ac   : > { %1411 = vmatpush1.bf16.msra.mxu0 %v1405_v44  ;;  %v374_v44 = vld [vmem:[#allocation2 + $0x158] sm:$0xff]  ;;  %v3447_v38 = vcombine.low %v422_v35, %v426_v36  ;;  %v3448_v39 = vcombine.high %v422_v35, %v426_v36 }
 0x1ad   : > { %1660 = vmatprep.subr.bf16.mxu0 %v3756_v16  ;;  %1267 = vmatpush1.bf16.msra.mxu1 %v3383_v41  ;;  %v3400_v48 = vcombine.high %v374_v44, %v378_v45  ;;  %v410_v16 = vld [vmem:[#allocation2 + $0x278] sm:$0xff] }
 0x1ae   : > { %1268 = vmatprep.subr.bf16.mxu1 %v3392_v42  ;;  %v434_v41 = vld [vmem:[#allocation2 + $0x338] sm:$0xff]  ;;  %v3790_v42 = vld [vmem:[#allocation5 + $0xc0] ss:$8 sps:$4 sm:$0xff]  }
 0x1b1   : > { %1269 = vmatpush1.bf16.msra.mxu1 %v3391_v47 }
 0x1b2   : > { %1270 = vmatprep.subr.bf16.mxu1 %v3400_v48 }
 0x246   : > { %v1379_v51 = vpop.f32.mrb[8].mxu0 }
 0x247   : > { %v1380_v52 = vadd.f32 %v1379_v51, %v4231_v50  ;;  %v1381_v53 = vpop.f32.mrb[9].mxu0  ;;  %v382_v51 = vld [vmem:[#allocation2 + $0x198] sm:$0xff] }
 0x248   : > { %v1382_v55 = vpop.f32.mrb[10].mxu0  ;;  %v3774_v53 = vld [vmem:[#allocation5 + $0x64] ss:$8 sps:$4 sm:$0xff]  }
 0x249   : > { %v1383_v56 = vpop.f32.mrb[11].mxu0  ;;  %v1386_v57 = vsel %vm1385_vm1, %v1380_v52, -inf  ;;  %v3399_v55 = vcombine.low %v374_v44, %v378_v45  ;;  %v438_v44 = vld [vmem:[#allocation2 + $0x358] sm:$0xff] }
 0x24a   : > { %1387 = vmax.xlane.f32.xlu0 %v1386_v57  ;;  %v3772_v57 = vld [vmem:[#allocation5 + $0x60] ss:$8 sps:$4 sm:$0xff]   ;;  %v442_v45 = vld [vmem:[#allocation2 + $0x378] sm:$0xff] }
 0x24b   : > { %1271 = vmatpush1.bf16.msra.mxu1 %v3399_v55  ;;  %v3464_v48 = vcombine.high %v438_v44, %v442_v45  ;;  %v3463_v55 = vcombine.low %v438_v44, %v442_v45 }
 0x2d7   : > { %v1388_v58 = vpop.xlane.xlu0 %1387 }
 0x2d8   : > { %v1389_v59 = vsub.f32 %v1380_v52, %v1388_v58  ;;  %v386_v52 = vld [vmem:[#allocation2 + $0x1b8] sm:$0xff] }
 0x2d9   : > { %v3408_v56 = vcombine.high %v382_v51, %v386_v52  ;;  %v390_v58 = vld [vmem:[#allocation2 + $0x1d8] sm:$0xff] }
 0x2da   : > { %v1390_v60 = vmul.f32 1.442695, %v1389_v59  ;;  %v394_v59 = vld [vmem:[#allocation2 + $0x1f8] sm:$0xff] }
 0x2db   : > { %1272 = vmatprep.subr.bf16.mxu1 %v3408_v56 }
 0x2dc   : > { %3850 = vpow2.f32 %v1390_v60  ;;  %v3777_v60 = vld [vmem:[#allocation5 + $0x74] ss:$8 sps:$4 sm:$0xff]  }
 0x2e6   : > { %v3851_v61 = vpop.eup %3850 }
 0x2e7   : > { %v1392_v62 = vsel %vm1385_vm1, %v3851_v61, 0.0 }
 0x2e8   : > { %1393 = vadd.xlane.f32.xlu1 %v1392_v62  ;;  %v3416_v62 = vcombine.high %v390_v58, %v394_v59 }
 0x375   : > { %v1394_v63 = vpop.xlane.xlu1 %1393 }
 0x376   : > { %3852 = vrcp.f32 %v1394_v63  ;;  %v3775_v63 = vld [vmem:[#allocation5 + $0x70] ss:$8 sps:$4 sm:$0xff]  }
 0x380   : > { %v3853_v0 = vpop.eup %3852 }
 0x381   : > { %v1396_v1 = vmul.f32 %v3853_v0, %v3851_v61  ;;  %v3407_v61 = vcombine.low %v382_v51, %v386_v52  ;;  %v398_v0 = vld [vmem:[#allocation2 + $0x218] sm:$0xff] }
 0x382   : > { %v446_v51 = vld [vmem:[#allocation2 + $0x398] sm:$0xff] }
 0x383   : > { %v1397_v2 = vpack.c.bf16 %v1396_v1, %v1396_v1  ;;  %v402_v1 = vld [vmem:[#allocation2 + $0x238] sm:$0xff]  ;;  %1273 = vmatpush1.bf16.msra.mxu1 %v3407_v61 }
 0x384   : > { %1274 = vmatprep.subr.bf16.mxu1 %v3416_v62  ;;  %v3423_v18 = vcombine.low %v398_v0, %v402_v1  ;;  %v450_v52 = vld [vmem:[#allocation2 + $0x3b8] sm:$0xff] }
 0x385   : > { %3482 = vmatmul.mubr.msk.bf16.vlgmr.msra.gmra.mrb[12].mxu0 %vm1385_vm1, %v1397_v2  ;;  %v3780_v2 = vld [vmem:[#allocation5 + $0x84] ss:$8 sps:$4 sm:$0xff]   ;;  %v3472_v56 = vcombine.high %v446_v51, %v450_v52  ;;  %v3471_v61 = vcombine.low %v446_v51, %v450_v52 }
 0x386   : > { %1661 = vmatpush1.bf16.msra.mxu0 %v3754_v15  ;;  %v406_v15 = vld [vmem:[#allocation2 + $0x258] sm:$0xff]  ;;  %v1783_v51 = vld [vmem:[#allocation2 + $0x428] sm:$0xff]  ;;  %v1786_v52 = vld [vmem:[#allocation2 + $0x440] sm:$0xff] }
 0x387   : > { %1662 = vmatprep.subr.bf16.mxu0 %v3759_v19  ;;  %v3432_v19 = vcombine.high %v406_v15, %v410_v16  ;;  %v3431_v21 = vcombine.low %v406_v15, %v410_v16 }
 0x38a   : > { %1663 = vmatpush1.bf16.msra.mxu0 %v3757_v24 }
 0x38b   : > { %1664 = vmatprep.subr.bf16.mxu0 %v3762_v27 }
 0x38e   : > { %1665 = vmatpush1.bf16.msra.mxu0 %v3760_v30  ;;  %v418_v30 = vld [vmem:[#allocation2 + $0x2b8] sm:$0xff] }
 0x38f   : > { %1666 = vmatprep.subr.bf16.mxu0 %v3765_v34  ;;  %v3440_v32 = vcombine.high %v414_v29, %v418_v30  ;;  %v3439_v34 = vcombine.low %v414_v29, %v418_v30 }
 0x392   : > { %1667 = vmatpush1.bf16.msra.mxu0 %v3763_v37  ;;  %v3792_v37 = vld [vmem:[#allocation5 + $0xc4] ss:$8 sps:$4 sm:$0xff]  }
 0x393   : > { %1668 = vmatprep.subr.bf16.mxu0 %v3768_v40  ;;  %v430_v40 = vld [vmem:[#allocation2 + $0x318] sm:$0xff] }
 0x394   : > { %v3455_v47 = vcombine.low %v430_v40, %v434_v41 }
 0x396   : > { %1669 = vmatpush1.bf16.msra.mxu0 %v3766_v43  ;;  %v3456_v43 = vcombine.high %v430_v40, %v434_v41 }
 0x397   : > { %1670 = vmatprep.subr.bf16.mxu0 %v3771_v46  ;;  %v3795_v46 = vld [vmem:[#allocation5 + $0xd4] ss:$8 sps:$4 sm:$0xff]  }
 0x39a   : > { %1671 = vmatpush1.bf16.msra.mxu0 %v3769_v49  ;;  %v3793_v49 = vld [vmem:[#allocation5 + $0xd0] ss:$8 sps:$4 sm:$0xff]  }
 0x39b   : > { %1672 = vmatprep.subr.bf16.mxu0 %v3774_v53  ;;  %v3798_v53 = vld [vmem:[#allocation5 + $0xe4] ss:$8 sps:$4 sm:$0xff]  }
 0x39e   : > { %1673 = vmatpush1.bf16.msra.mxu0 %v3772_v57  ;;  %v3796_v57 = vld [vmem:[#allocation5 + $0xe0] ss:$8 sps:$4 sm:$0xff]  }
 0x39f   : > { %1674 = vmatprep.subr.bf16.mxu0 %v3777_v60  ;;  %v3801_v60 = vld [vmem:[#allocation5 + $0xf4] ss:$8 sps:$4 sm:$0xff]  }
 0x3a2   : > { %1675 = vmatpush1.bf16.msra.mxu0 %v3775_v63  ;;  %v3799_v63 = vld [vmem:[#allocation5 + $0xf0] ss:$8 sps:$4 sm:$0xff]  }
 0x3a3   : > { %1676 = vmatprep.subr.bf16.mxu0 %v3780_v2 }
 0x458   : > { %v4237_v3 = vpop.f32.mrb[12].mxu0 }
 0x459   : > { %v4239_v4 = vpop.f32.mrb[13].mxu0 }
 0x45a   : > { %v1448_v6 = vpop.f32.mrb[14].mxu0  ;;  %v1451_v8 = vadd.f32 %v4239_v4, %v4237_v3 }
 0x45b   : > { %v1449_v14 = vpop.f32.mrb[15].mxu0  ;;  %v3415_v6 = vcombine.low %v390_v58, %v394_v59  ;;  %v454_v58 = vld [vmem:[#allocation2 + $0x3d8] sm:$0xff] }
 0x45c   : > { %1452 = vadd.xlane.f32.xlu1 %v1451_v8  ;;  %v3424_v8 = vcombine.high %v398_v0, %v402_v1  ;;  %v3778_v14 = vld [vmem:[#allocation5 + $0x80] ss:$8 sps:$4 sm:$0xff]   ;;  %v458_v59 = vld [vmem:[#allocation2 + $0x3f8] sm:$0xff] }
 0x45d   : > { %1275 = vmatpush1.bf16.msra.mxu1 %v3415_v6  ;;  %1677 = vmatpush1.bf16.msra.mxu0 %v3778_v14  ;;  %v3480_v62 = vcombine.high %v454_v58, %v458_v59  ;;  %v3479_v0 = vcombine.low %v454_v58, %v458_v59  ;;  %v4258_v14 = vsub.s32 5, %v4191_v9  ;;  %v1787_v58 = vld [vmem:[#allocation2 + $0x448] sm:$0xff] }
 0x45e   : > { %1276 = vmatprep.subr.bf16.mxu1 %v3424_v8  ;;  %1678 = vmatprep.subr.bf16.mxu0 %v3783_v17  ;;  %v4255_v8 = vsub.s32 4, %v4191_v9  ;;  %v1791_v59 = vld [vmem:[#allocation2 + $0x468] sm:$0xff] }
 0x460   : > { %v1475_v15 = vrot.slane %v4204_v12, %v4255_v8  ;;  %v1471_v16 = vrot.slane %v4199_v11, %v4255_v8 }
 0x461   : > { %1277 = vmatpush1.bf16.msra.mxu1 %v3423_v18  ;;  %1679 = vmatpush1.bf16.msra.mxu0 %v3781_v20  ;;  %v1481_v20 = vrot.slane %v4199_v11, %v4258_v14 }
 0x462   : > { %1278 = vmatprep.subr.bf16.mxu1 %v3432_v19  ;;  %1680 = vmatprep.subr.bf16.mxu0 %v3786_v28 }
 0x465   : > { %1279 = vmatpush1.bf16.msra.mxu1 %v3431_v21  ;;  %1681 = vmatpush1.bf16.msra.mxu0 %v3784_v31 }
 0x466   : > { %1280 = vmatprep.subr.bf16.mxu1 %v3440_v32 }
 0x469   : > { %1281 = vmatpush1.bf16.msra.mxu1 %v3439_v34  ;;  %v4271_v34 = vsub.s32 6, %v4191_v9 }
 0x46a   : > { %1282 = vmatprep.subr.bf16.mxu1 %v3448_v39 }
 0x46b   : > { %v1499_v35 = vrot.slane %v4204_v12, %v4271_v34 }
 0x46d   : > { %1283 = vmatpush1.bf16.msra.mxu1 %v3447_v38 }
 0x46e   : > { %1284 = vmatprep.subr.bf16.mxu1 %v3456_v43 }
 0x471   : > { %1285 = vmatpush1.bf16.msra.mxu1 %v3455_v47  ;;  %v1779_v47 = vld [vmem:[#allocation2 + $0x408] sm:$0xff] }
 0x472   : > { %1286 = vmatprep.subr.bf16.mxu1 %v3464_v48 }
 0x475   : > { %1287 = vmatpush1.bf16.msra.mxu1 %v3463_v55  ;;  %v3521_v55 = vcombine.low %v1779_v47, %v1783_v51 }
 0x476   : > { %1288 = vmatprep.subr.bf16.mxu1 %v3472_v56  ;;  %v3522_v56 = vcombine.high %v1779_v47, %v1783_v51  ;;  %v1838_v51 = vld [vmem:[#allocation2 + $0x5e0] sm:$0xff] }
 0x479   : > { %1289 = vmatpush1.bf16.msra.mxu1 %v3471_v61  ;;  %v3530_v61 = vcombine.high %v1787_v58, %v1791_v59 }
 0x47a   : > { %1290 = vmatprep.subr.bf16.mxu1 %v3480_v62  ;;  %v1798_v62 = vld [vmem:[#allocation2 + $0x4a0] sm:$0xff] }
 0x47d   : > { %1291 = vmatpush1.bf16.msra.mxu1 %v3479_v0  ;;  %v1799_v0 = vld [vmem:[#allocation2 + $0x4a8] sm:$0xff] }
 0x480   : > { %1293 = vmatmul.mubr.bf16.vlgmr.msra.gmra.mrb[4].mxu1 %v4179_v7  ;;  %v1485_v7 = vrot.slane %v4204_v12, %v4258_v14 }
 0x4e9   : > { %v1453_v22 = vpop.xlane.xlu1 %1452 }
 0x4ea   : > { %v1455_v23 = vmul.f32 0.00390625, %v1453_v22 }
 0x4ec   : > { %v4244_v24 = vsub.f32 %v4237_v3, %v1455_v23  ;;  %v4247_v25 = vsub.f32 %v4239_v4, %v1455_v23  ;;  %v3787_v3 = vld [vmem:[#allocation5 + $0xb0] ss:$8 sps:$4 sm:$0xff]   ;;  %v3789_v4 = vld [vmem:[#allocation5 + $0xb4] ss:$8 sps:$4 sm:$0xff]  }
 0x4ed   : > { %1682 = vmatprep.subr.bf16.mxu0 %v3789_v4 }
 0x4ee   : > { %v1458_v26 = vmul.f32 %v4244_v24, %v4244_v24  ;;  %v1459_v54 = vmul.f32 %v4247_v25, %v4247_v25  ;;  %1683 = vmatpush1.bf16.msra.mxu0 %v3787_v3  ;;  %v1495_v3 = vrot.slane %v4199_v11, %v4271_v34 }
 0x4ef   : > { %1684 = vmatprep.subr.bf16.mxu0 %v3792_v37 }
 0x4f0   : > { %v1460_v27 = vadd.f32 %v1459_v54, %v1458_v26 }
 0x4f2   : > { %1461 = vadd.xlane.f32.xlu1 %v1460_v27  ;;  %1685 = vmatpush1.bf16.msra.mxu0 %v3790_v42 }
 0x4f3   : > { %1686 = vmatprep.subr.bf16.mxu0 %v3795_v46  ;;  %v1782_v46 = vld [vmem:[#allocation2 + $0x420] sm:$0xff] }
 0x4f6   : > { %1687 = vmatpush1.bf16.msra.mxu0 %v3793_v49 }
 0x4f7   : > { %1688 = vmatprep.subr.bf16.mxu0 %v3798_v53  ;;  %v1790_v53 = vld [vmem:[#allocation2 + $0x460] sm:$0xff] }
 0x4fa   : > { %1689 = vmatpush1.bf16.msra.mxu0 %v3796_v57  ;;  %v3528_v57 = vcombine.high %v1786_v52, %v1790_v53 }
 0x4fb   : > { %1690 = vmatprep.subr.bf16.mxu0 %v3801_v60  ;;  %v1794_v60 = vld [vmem:[#allocation2 + $0x480] sm:$0xff] }
 0x4fe   : > { %1691 = vmatpush1.bf16.msra.mxu0 %v3799_v63  ;;  %v1795_v63 = vld [vmem:[#allocation2 + $0x488] sm:$0xff] }
 0x4ff   : > { %2627 = vmatprep.subr.bf16.mxu0 %v3522_v56 }
 0x553   : > { %v1294_v30 = vpop.f32.mrb[4].mxu1 }
 0x57f   : > { %v1462_v1 = vpop.xlane.xlu1 %1461 }
 0x580   : > { %v1463_v2 = vmul.f32 0.00390625, %v1462_v1  ;;  %v3527_v1 = vcombine.low %v1786_v52, %v1790_v53  ;;  %v1835_v52 = vld [vmem:[#allocation2 + $0x5c8] sm:$0xff] }
 0x581   : > { %v1839_v53 = vld [vmem:[#allocation2 + $0x5e8] sm:$0xff] }
 0x582   : > { %v1464_v6 = vadd.f32 1e-05, %v1463_v2  ;;  %v3529_v2 = vcombine.low %v1787_v58, %v1791_v59  ;;  %v3578_v58 = vcombine.high %v1835_v52, %v1839_v53  ;;  %v1842_v59 = vld [vmem:[#allocation2 + $0x600] sm:$0xff] }
 0x584   : > { %3854 = vrsqrt.f32 %v1464_v6  ;;  %v3536_v6 = vcombine.high %v1794_v60, %v1798_v62 }
 0x58e   : > { %v3855_v17 = vpop.eup %3854 }
 0x58f   : > { %v1467_v18 = vmul.f32 %v3855_v17, %v4247_v25  ;;  %v1466_v19 = vmul.f32 %v3855_v17, %v4244_v24  ;;  %v1296_v25 = vpop.f32.mrb[5].mxu1  ;;  %v4274_v24 = vsub.s32 3, %v4191_v9  ;;  %v1806_v17 = vld [vmem:[#allocation2 + $0x4e0] sm:$0xff] }
 0x590   : > { %v1298_v31 = vpop.f32.mrb[6].mxu1 }
 0x591   : > { %v1477_v21 = vmul.f32 %v1475_v15, %v1467_v18  ;;  %v1476_v22 = vmul.f32 %v1471_v16, %v1466_v19  ;;  %v1299_v32 = vpop.f32.mrb[7].mxu1  ;;  %v1334_v4 = vrot.slane %v4199_v11, %v4274_v24  ;;  %v1338_v36 = vrot.slane %v4204_v12, %v4274_v24  ;;  %v1778_v12 = vld [vmem:[#allocation2 + $0x400] sm:$0xff]  ;;  %v1803_v18 = vld [vmem:[#allocation2 + $0x4c8] sm:$0xff] }
 0x592   : > { %v3519_v48 = vcombine.low %v1778_v12, %v1782_v46  ;;  %v3520_v49 = vcombine.high %v1778_v12, %v1782_v46  ;;  %v3538_v15 = vcombine.high %v1795_v63, %v1799_v0  ;;  %v1802_v16 = vld [vmem:[#allocation2 + $0x4c0] sm:$0xff]  ;;  %v3535_v19 = vcombine.low %v1794_v60, %v1798_v62  ;;  %v1847_v62 = vld [vmem:[#allocation2 + $0x628] sm:$0xff] }
 0x593   : > { %v1487_v23 = vadd.f32 %v1485_v7, %v1477_v21  ;;  %v1486_v26 = vadd.f32 %v1481_v20, %v1476_v22  ;;  %v4286_v40 = vadd.f32 %v1334_v4, %v1294_v30  ;;  %v4290_v42 = vadd.f32 %v1338_v36, %v1296_v25  ;;  %v1807_v7 = vld [vmem:[#allocation2 + $0x4e8] sm:$0xff]  ;;  %v1818_v31 = vld [vmem:[#allocation2 + $0x540] sm:$0xff] }
 0x594   : > { %2586 = vmatprep.subr.bf16.mxu1 %v3520_v49  ;;  %v3537_v20 = vcombine.low %v1795_v63, %v1799_v0  ;;  %v3544_v21 = vcombine.high %v1802_v16, %v1806_v17  ;;  %v3546_v22 = vcombine.high %v1803_v18, %v1807_v7  ;;  %v1822_v32 = vld [vmem:[#allocation2 + $0x560] sm:$0xff]  ;;  %v1823_v4 = vld [vmem:[#allocation2 + $0x568] sm:$0xff]  ;;  %v3577_v0 = vcombine.low %v1835_v52, %v1839_v53 }
 0x595   : > { %v1489_v54 = vmax.f32 %v1487_v23, 0.0  ;;  %v1488_v27 = vmax.f32 %v1486_v26, 0.0  ;;  %v1737_v45 = vadd.f32 %v4290_v42, %v4286_v40  ;;  %2587 = vmatpush1.bf16.msra.mxu1 %v3519_v48  ;;  %v1810_v23 = vld [vmem:[#allocation2 + $0x500] sm:$0xff]  ;;  %v3559_v12 = vcombine.low %v1818_v31, %v1822_v32 }
 0x596   : > { %2588 = vmatprep.subr.bf16.mxu1 %v3528_v57  ;;  %v1814_v26 = vld [vmem:[#allocation2 + $0x520] sm:$0xff] }
 0x597   : > { %v1491_v28 = vpack.c.bf16 %v1489_v54, %v1489_v54  ;;  %v1490_v29 = vpack.c.bf16 %v1488_v27, %v1488_v27  ;;  %v1811_v54 = vld [vmem:[#allocation2 + $0x508] sm:$0xff]  ;;  %v3552_v30 = vcombine.high %v1810_v23, %v1814_v26  ;;  %v1834_v49 = vld [vmem:[#allocation2 + $0x5c0] sm:$0xff] }
 0x598   : > { %v1815_v27 = vld [vmem:[#allocation2 + $0x528] sm:$0xff]  ;;  %v3576_v57 = vcombine.high %v1834_v49, %v1838_v51  ;;  %v1846_v60 = vld [vmem:[#allocation2 + $0x620] sm:$0xff]  ;;  %v3575_v63 = vcombine.low %v1834_v49, %v1838_v51 }
 0x599   : > { %1692 = vmatprep.mubr.bf16.mxu0 %v1491_v28  ;;  %2589 = vmatpush1.bf16.msra.mxu1 %v3527_v1  ;;  %v3543_v28 = vcombine.low %v1802_v16, %v1806_v17  ;;  %v3554_v25 = vcombine.high %v1811_v54, %v1815_v27  ;;  %v3553_v36 = vcombine.low %v1811_v54, %v1815_v27  ;;  %v1874_v52 = vld [vmem:[#allocation2 + $0x700] sm:$0xff] }
 0x59a   : > { %1693 = vmatmul.mubr.bf16.vlgmr.msra.gmra.mrb[16].mxu0 %v1490_v29  ;;  %2590 = vmatprep.subr.bf16.mxu1 %v3536_v6  ;;  %v3545_v29 = vcombine.low %v1803_v18, %v1807_v7  ;;  %v3584_v1 = vcombine.high %v1842_v59, %v1846_v60  ;;  %v3583_v6 = vcombine.low %v1842_v59, %v1846_v60  ;;  %v1878_v53 = vld [vmem:[#allocation2 + $0x720] sm:$0xff] }
 0x59b   : > { %2628 = vmatpush1.bf16.msra.mxu0 %v3521_v55 }
 0x59c   : > { %2629 = vmatprep.subr.bf16.mxu0 %v3530_v61  ;;  %v1843_v61 = vld [vmem:[#allocation2 + $0x608] sm:$0xff] }
 0x59d   : > { %2591 = vmatpush1.bf16.msra.mxu1 %v3535_v19 }
 0x59e   : > { %2592 = vmatprep.subr.bf16.mxu1 %v3544_v21 }
 0x59f   : > { %2630 = vmatpush1.bf16.msra.mxu0 %v3529_v2  ;;  %v3586_v2 = vcombine.high %v1843_v61, %v1847_v62 }
 0x5a0   : > { %2631 = vmatprep.subr.bf16.mxu0 %v3538_v15  ;;  %v3585_v15 = vcombine.low %v1843_v61, %v1847_v62  ;;  %v1882_v61 = vld [vmem:[#allocation2 + $0x740] sm:$0xff] }
 0x5a1   : > { %2593 = vmatpush1.bf16.msra.mxu1 %v3543_v28  ;;  %v1850_v28 = vld [vmem:[#allocation2 + $0x640] sm:$0xff] }
 0x5a2   : > { %2594 = vmatprep.subr.bf16.mxu1 %v3552_v30  ;;  %v1851_v30 = vld [vmem:[#allocation2 + $0x648] sm:$0xff]  ;;  %v1886_v62 = vld [vmem:[#allocation2 + $0x760] sm:$0xff] }
 0x5a3   : > { %2632 = vmatpush1.bf16.msra.mxu0 %v3537_v20 }
 0x5a4   : > { %2633 = vmatprep.subr.bf16.mxu0 %v3546_v22 }
 0x5a7   : > { %2634 = vmatpush1.bf16.msra.mxu0 %v3545_v29  ;;  %v1854_v29 = vld [vmem:[#allocation2 + $0x660] sm:$0xff] }
 0x5a8   : > { %2635 = vmatprep.subr.bf16.mxu0 %v3554_v25  ;;  %v3592_v25 = vcombine.high %v1850_v28, %v1854_v29 }
 0x5ab   : > { %2636 = vmatpush1.bf16.msra.mxu0 %v3553_v36 }
 0x66d   : > { %v1694_v37 = vpop.f32.mrb[16].mxu0 }
 0x66e   : > { %v4284_v38 = vadd.f32 %v1694_v37, %v1495_v3  ;;  %v1696_v39 = vpop.f32.mrb[17].mxu0  ;;  %v1819_v3 = vld [vmem:[#allocation2 + $0x548] sm:$0xff]  ;;  %v3560_v37 = vcombine.high %v1818_v31, %v1822_v32 }
 0x66f   : > { %v4288_v41 = vadd.f32 %v1696_v39, %v1499_v35  ;;  %v1698_v43 = vpop.f32.mrb[18].mxu0  ;;  %v3551_v35 = vcombine.low %v1810_v23, %v1814_v26  ;;  %v3562_v39 = vcombine.high %v1819_v3, %v1823_v4  ;;  %v3561_v46 = vcombine.low %v1819_v3, %v1823_v4  ;;  %v1855_v31 = vld [vmem:[#allocation2 + $0x668] sm:$0xff]  ;;  %v1862_v4 = vld [vmem:[#allocation2 + $0x6a0] sm:$0xff] }
 0x670   : > { %v1699_v44 = vpop.f32.mrb[19].mxu0  ;;  %v1826_v43 = vld [vmem:[#allocation2 + $0x580] sm:$0xff]  ;;  %v3593_v32 = vcombine.low %v1851_v30, %v1855_v31  ;;  %v3594_v3 = vcombine.high %v1851_v30, %v1855_v31  ;;  %v1903_v30 = vld [vmem:[#allocation2 + $0x7e8] sm:$0xff] }
 0x671   : > { %v1701_v11 = vadd.f32 %v4288_v41, %v4284_v38  ;;  %v1830_v44 = vld [vmem:[#allocation2 + $0x5a0] sm:$0xff]  ;;  %2595 = vmatpush1.bf16.msra.mxu1 %v3551_v35  ;;  %2637 = vmatprep.subr.bf16.mxu0 %v3562_v39  ;;  %v1859_v35 = vld [vmem:[#allocation2 + $0x688] sm:$0xff] }
 0x672   : > { %2596 = vmatprep.subr.bf16.mxu1 %v3560_v37  ;;  %v3568_v47 = vcombine.high %v1826_v43, %v1830_v44  ;;  %v3567_v55 = vcombine.low %v1826_v43, %v1830_v44  ;;  %2638 = vmatpush1.bf16.msra.mxu0 %v3561_v46  ;;  %v1863_v37 = vld [vmem:[#allocation2 + $0x6a8] sm:$0xff] }
 0x673   : > { %1702 = vadd.xlane.f32.xlu1 %v1701_v11  ;;  %v1827_v11 = vld [vmem:[#allocation2 + $0x588] sm:$0xff]  ;;  %v3601_v43 = vcombine.low %v1859_v35, %v1863_v37  ;;  %v3602_v44 = vcombine.high %v1859_v35, %v1863_v37  ;;  %v1785_v35 = vld [vmem:[#allocation2 + $0x438] sm:$0xff] }
 0x675   : > { %2597 = vmatpush1.bf16.msra.mxu1 %v3559_v12  ;;  %v1867_v12 = vld [vmem:[#allocation2 + $0x6c8] sm:$0xff] }
 0x676   : > { %2598 = vmatprep.subr.bf16.mxu1 %v3568_v47  ;;  %v1871_v47 = vld [vmem:[#allocation2 + $0x6e8] sm:$0xff] }
 0x677   : > { %1738 = vadd.xlane.f32.xlu1 %v1737_v45  ;;  %v1831_v45 = vld [vmem:[#allocation2 + $0x5a8] sm:$0xff]  ;;  %v3609_v49 = vcombine.low %v1867_v12, %v1871_v47  ;;  %v3610_v51 = vcombine.high %v1867_v12, %v1871_v47  ;;  %v4329_v47 = vsub.s32 7, %v4191_v9  ;;  %v493_v9 = vld [vmem:[%s4484_s5 + $0x10] sm:$0x7] }
 0x678   : > { %v3570_v48 = vcombine.high %v1827_v11, %v1831_v45  ;;  %v3569_v56 = vcombine.low %v1827_v11, %v1831_v45  ;;  %v1866_v11 = vld [vmem:[#allocation2 + $0x6c0] sm:$0xff] }
 0x679   : > { %2599 = vmatpush1.bf16.msra.mxu1 %v3567_v55  ;;  %v1870_v45 = vld [vmem:[#allocation2 + $0x6e0] sm:$0xff]  ;;  %v1875_v55 = vld [vmem:[#allocation2 + $0x708] sm:$0xff] }
 0x67a   : > { %2639 = vmatprep.subr.bf16.mxu0 %v3570_v48  ;;  %2600 = vmatprep.subr.bf16.mxu1 %v3576_v57  ;;  %v3608_v46 = vcombine.high %v1866_v11, %v1870_v45  ;;  %v3607_v48 = vcombine.low %v1866_v11, %v1870_v45  ;;  %v1879_v57 = vld [vmem:[#allocation2 + $0x728] sm:$0xff] }
 0x67b   : > { %2640 = vmatpush1.bf16.msra.mxu0 %v3569_v56  ;;  %v3616_v56 = vcombine.high %v1874_v52, %v1878_v53  ;;  %v3617_v59 = vcombine.low %v1875_v55, %v1879_v57  ;;  %v3618_v60 = vcombine.high %v1875_v55, %v1879_v57  ;;  %v1756_v57 = vrot.slane %v493_v9, %v4194_v10 }
 0x67c   : > { %2641 = vmatprep.subr.bf16.mxu0 %v3578_v58  ;;  %v3615_v58 = vcombine.low %v1874_v52, %v1878_v53  ;;  %v494_v52 = vld [vmem:[%s4484_s5 + $0x18] sm:$0x7]  ;;  %v3870_v53 = vld [vmem:[%s4484_s5 + $0x8] sm:$0xff] }
 0x67d   : > { %2601 = vmatpush1.bf16.msra.mxu1 %v3575_v63  ;;  %v1883_v63 = vld [vmem:[#allocation2 + $0x748] sm:$0xff]  ;;  %v1724_v55 = vrot.slane %v3870_v53, %v4329_v47 }
 0x67e   : > { %2602 = vmatprep.subr.bf16.mxu1 %v3584_v1  ;;  %v1887_v1 = vld [vmem:[#allocation2 + $0x768] sm:$0xff] }
 0x67f   : > { %2642 = vmatpush1.bf16.msra.mxu0 %v3577_v0  ;;  %v3624_v0 = vcombine.high %v1882_v61, %v1886_v62 }
 0x680   : > { %2643 = vmatprep.subr.bf16.mxu0 %v3586_v2  ;;  %v3623_v2 = vcombine.low %v1882_v61, %v1886_v62  ;;  %v1730_v61 = vrot.slane %v493_v9, %v4207_v13  ;;  %v1766_v62 = vrot.slane %v493_v9, %v4219_v33 }
 0x681   : > { %2603 = vmatpush1.bf16.msra.mxu1 %v3583_v6  ;;  %v3625_v6 = vcombine.low %v1883_v63, %v1887_v1 }
 0x682   : > { %2604 = vmatprep.subr.bf16.mxu1 %v3592_v25 }
 0x683   : > { %2644 = vmatpush1.bf16.msra.mxu0 %v3585_v15  ;;  %v3626_v15 = vcombine.high %v1883_v63, %v1887_v1 }
 0x684   : > { %2645 = vmatprep.subr.bf16.mxu0 %v3594_v3  ;;  %v4318_v3 = vld [vmem:[#allocation2 + $0x430] sm:$0xff] }
 0x687   : > { %2646 = vmatpush1.bf16.msra.mxu0 %v3593_v32  ;;  %v4316_v32 = vld [vmem:[#allocation2 + $0x410] sm:$0xff] }
 0x688   : > { %2647 = vmatprep.subr.bf16.mxu0 %v3602_v44 }
 0x68b   : > { %2648 = vmatpush1.bf16.msra.mxu0 %v3601_v43 }
 0x68c   : > { %2649 = vmatprep.subr.bf16.mxu0 %v3610_v51 }
 0x68f   : > { %2650 = vmatpush1.bf16.msra.mxu0 %v3609_v49 }
 0x690   : > { %2651 = vmatprep.subr.bf16.mxu0 %v3618_v60  ;;  %v1770_v60 = vrot.slane %v494_v52, %v4219_v33 }
 0x693   : > { %2652 = vmatpush1.bf16.msra.mxu0 %v3617_v59  ;;  %v1734_v59 = vrot.slane %v494_v52, %v4207_v13 }
 0x694   : > { %2653 = vmatprep.subr.bf16.mxu0 %v3626_v15 }
 0x697   : > { %2654 = vmatpush1.bf16.msra.mxu0 %v3625_v6 }
 0x700   : > { %v1703_v16 = vpop.xlane.xlu1 %1702 }
 0x701   : > { %v1704_v17 = vmul.f32 0.00390625, %v1703_v16  ;;  %v1890_v16 = vld [vmem:[#allocation2 + $0x780] sm:$0xff] }
 0x703   : > { %v4297_v18 = vsub.f32 %v4284_v38, %v1704_v17  ;;  %v4300_v7 = vsub.f32 %v4288_v41, %v1704_v17  ;;  %v1894_v17 = vld [vmem:[#allocation2 + $0x7a0] sm:$0xff] }
 0x704   : > { %v1739_v19 = vpop.xlane.xlu1 %1738 }
 0x705   : > { %v1740_v20 = vmul.f32 0.00390625, %v1739_v19  ;;  %v1707_v21 = vmul.f32 %v4297_v18, %v4297_v18  ;;  %v1708_v22 = vmul.f32 %v4300_v7, %v4300_v7  ;;  %v1891_v19 = vld [vmem:[#allocation2 + $0x788] sm:$0xff] }
 0x707   : > { %v4307_v23 = vsub.f32 %v4286_v40, %v1740_v20  ;;  %v4310_v26 = vsub.f32 %v4290_v42, %v1740_v20  ;;  %v1709_v54 = vadd.f32 %v1708_v22, %v1707_v21  ;;  %v3591_v40 = vcombine.low %v1850_v28, %v1854_v29  ;;  %v1858_v42 = vld [vmem:[#allocation2 + $0x680] sm:$0xff]  ;;  %v1895_v22 = vld [vmem:[#allocation2 + $0x7a8] sm:$0xff] }
 0x708   : > { %v3600_v36 = vcombine.high %v1858_v42, %v1862_v4  ;;  %v3599_v39 = vcombine.low %v1858_v42, %v1862_v4  ;;  %v3631_v20 = vcombine.low %v1890_v16, %v1894_v17  ;;  %v3632_v21 = vcombine.high %v1890_v16, %v1894_v17  ;;  %v1899_v29 = vld [vmem:[#allocation2 + $0x7c8] sm:$0xff]  ;;  %v4320_v42 = vld [vmem:[#allocation2 + $0x418] sm:$0xff] }
 0x709   : > { %1710 = vadd.xlane.f32.xlu1 %v1709_v54  ;;  %v1743_v38 = vmul.f32 %v4307_v23, %v4307_v23  ;;  %v1744_v41 = vmul.f32 %v4310_v26, %v4310_v26  ;;  %2605 = vmatpush1.bf16.msra.mxu1 %v3591_v40  ;;  %v1898_v54 = vld [vmem:[#allocation2 + $0x7c0] sm:$0xff]  ;;  %v3642_v25 = vcombine.high %v1899_v29, %v1903_v30 }
 0x70a   : > { %2606 = vmatprep.subr.bf16.mxu1 %v3600_v36  ;;  %v3641_v40 = vcombine.low %v1899_v29, %v1903_v30  ;;  %v3524_v4 = vcombine.high %v4316_v32, %v4318_v3  ;;  %v3523_v36 = vcombine.low %v4316_v32, %v4318_v3  ;;  %v3525_v37 = vcombine.low %v4320_v42, %v1785_v35  ;;  %v1793_v29 = vld [vmem:[#allocation2 + $0x478] sm:$0xff] }
 0x70b   : > { %v1745_v27 = vadd.f32 %v1744_v41, %v1743_v38  ;;  %v1902_v38 = vld [vmem:[#allocation2 + $0x7e0] sm:$0xff]  ;;  %v3633_v41 = vcombine.low %v1891_v19, %v1895_v22  ;;  %v1797_v32 = vld [vmem:[#allocation2 + $0x498] sm:$0xff] }
 0x70c   : > { %v3640_v28 = vcombine.high %v1898_v54, %v1902_v38  ;;  %v3639_v31 = vcombine.low %v1898_v54, %v1902_v38  ;;  %v1801_v3 = vld [vmem:[#allocation2 + $0x4b8] sm:$0xff] }
 0x70d   : > { %1746 = vadd.xlane.f32.xlu1 %v1745_v27  ;;  %2607 = vmatpush1.bf16.msra.mxu1 %v3599_v39  ;;  %v3634_v27 = vcombine.high %v1891_v19, %v1895_v22  ;;  %v3526_v39 = vcombine.high %v4320_v42, %v1785_v35 }
 0x70e   : > { %2608 = vmatprep.subr.bf16.mxu1 %v3608_v46 }
 0x70f   : > { %2655 = vmatprep.subr.bf16.mxu0 %v3634_v27  ;;  %v1792_v27 = vld [vmem:[#allocation2 + $0x470] sm:$0xff] }
 0x710   : > { %2656 = vmatpush1.bf16.msra.mxu0 %v3633_v41  ;;  %v1788_v41 = vld [vmem:[#allocation2 + $0x450] sm:$0xff] }
 0x711   : > { %2609 = vmatpush1.bf16.msra.mxu1 %v3607_v48  ;;  %2657 = vmatprep.subr.bf16.mxu0 %v3642_v25  ;;  %v3532_v25 = vcombine.high %v1788_v41, %v1792_v27  ;;  %v3531_v42 = vcombine.low %v1788_v41, %v1792_v27 }
 0x712   : > { %2610 = vmatprep.subr.bf16.mxu1 %v3616_v56  ;;  %v1760_v56 = vrot.slane %v494_v52, %v4194_v10  ;;  %v1817_v52 = vld [vmem:[#allocation2 + $0x538] sm:$0xff] }
 0x714   : > { %2658 = vmatpush1.bf16.msra.mxu0 %v3641_v40  ;;  %v1800_v40 = vld [vmem:[#allocation2 + $0x4b0] sm:$0xff] }
 0x715   : > { %2611 = vmatpush1.bf16.msra.mxu1 %v3615_v58  ;;  %2709 = vmatprep.subr.bf16.mxu0 %v3526_v39  ;;  %v3542_v39 = vcombine.high %v1797_v32, %v1801_v3 }
 0x716   : > { %2612 = vmatprep.subr.bf16.mxu1 %v3624_v0 }
 0x719   : > { %2613 = vmatpush1.bf16.msra.mxu1 %v3623_v2 }
 0x71a   : > { %2614 = vmatprep.subr.bf16.mxu1 %v3632_v21 }
 0x71d   : > { %2615 = vmatpush1.bf16.msra.mxu1 %v3631_v20 }
 0x71e   : > { %2616 = vmatprep.subr.bf16.mxu1 %v3640_v28  ;;  %v1789_v28 = vld [vmem:[#allocation2 + $0x458] sm:$0xff] }
 0x721   : > { %2617 = vmatpush1.bf16.msra.mxu1 %v3639_v31  ;;  %v3534_v31 = vcombine.high %v1789_v28, %v1793_v29 }
 0x722   : > { %2668 = vmatprep.subr.bf16.mxu1 %v3524_v4  ;;  %v3533_v4 = vcombine.low %v1789_v28, %v1793_v29  ;;  %v1844_v28 = vld [vmem:[#allocation2 + $0x610] sm:$0xff] }
 0x723   : > { %v1848_v29 = vld [vmem:[#allocation2 + $0x630] sm:$0xff] }
 0x796   : > { %v1711_v43 = vpop.xlane.xlu1 %1710 }
 0x797   : > { %v1712_v44 = vmul.f32 0.00390625, %v1711_v43  ;;  %v1804_v43 = vld [vmem:[#allocation2 + $0x4d0] sm:$0xff] }
 0x799   : > { %v1713_v11 = vadd.f32 1e-05, %v1712_v44  ;;  %v1808_v44 = vld [vmem:[#allocation2 + $0x4f0] sm:$0xff] }
 0x79a   : > { %v1747_v45 = vpop.xlane.xlu1 %1746  ;;  %v3547_v53 = vcombine.low %v1804_v43, %v1808_v44 }
 0x79b   : > { %3856 = vrsqrt.f32 %v1713_v11  ;;  %v1748_v12 = vmul.f32 0.00390625, %v1747_v45  ;;  %v1805_v11 = vld [vmem:[#allocation2 + $0x4d8] sm:$0xff] }
 0x79c   : > { %v1809_v45 = vld [vmem:[#allocation2 + $0x4f8] sm:$0xff] }
 0x79d   : > { %v1749_v46 = vadd.f32 1e-05, %v1748_v12 }
 0x79f   : > { %3858 = vrsqrt.f32 %v1749_v46  ;;  %v3541_v46 = vcombine.low %v1797_v32, %v1801_v3  ;;  %v1852_v3 = vld [vmem:[#allocation2 + $0x650] sm:$0xff] }
 0x7a5   : > { %v3857_v48 = vpop.eup %3856 }
 0x7a6   : > { %v1715_v49 = vmul.f32 %v3857_v48, %v4297_v18  ;;  %v1716_v51 = vmul.f32 %v3857_v48, %v4300_v7  ;;  %v3871_v18 = vld [vmem:[%s4484_s5] sm:$0xff]  ;;  %v1812_v48 = vld [vmem:[#allocation2 + $0x510] sm:$0xff] }
 0x7a7   : > { %v1720_v7 = vrot.slane %v3871_v18, %v4329_v47 }
 0x7a8   : > { %v1726_v1 = vmul.f32 %v1724_v55, %v1716_v51  ;;  %v1813_v51 = vld [vmem:[#allocation2 + $0x518] sm:$0xff]  ;;  %v3549_v55 = vcombine.low %v1805_v11, %v1809_v45 }
 0x7a9   : > { %v3859_v58 = vpop.eup %3858  ;;  %v1725_v2 = vmul.f32 %v1720_v7, %v1715_v49  ;;  %v1816_v49 = vld [vmem:[#allocation2 + $0x530] sm:$0xff]  ;;  %v3558_v18 = vcombine.high %v1813_v51, %v1817_v52 }
 0x7aa   : > { %v1751_v63 = vmul.f32 %v3859_v58, %v4307_v23  ;;  %v1752_v0 = vmul.f32 %v3859_v58, %v4310_v26  ;;  %v1736_v16 = vadd.f32 %v1734_v59, %v1726_v1  ;;  %v1796_v26 = vld [vmem:[#allocation2 + $0x490] sm:$0xff]  ;;  %v3556_v9 = vcombine.high %v1812_v48, %v1816_v49  ;;  %v1825_v58 = vld [vmem:[#allocation2 + $0x578] sm:$0xff] }
 0x7ab   : > { %v1735_v19 = vadd.f32 %v1730_v61, %v1725_v2  ;;  %v3540_v35 = vcombine.high %v1796_v26, %v1800_v40  ;;  %v3539_v12 = vcombine.low %v1796_v26, %v1800_v40  ;;  %v1820_v7 = vld [vmem:[#allocation2 + $0x550] sm:$0xff]  ;;  %v3555_v59 = vcombine.low %v1812_v48, %v1816_v49  ;;  %v1829_v1 = vld [vmem:[#allocation2 + $0x598] sm:$0xff] }
 0x7ac   : > { %v1762_v6 = vmul.f32 %v1760_v56, %v1752_v0  ;;  %v1761_v15 = vmul.f32 %v1756_v57, %v1751_v63  ;;  %v1824_v56 = vld [vmem:[#allocation2 + $0x570] sm:$0xff]  ;;  %v1821_v57 = vld [vmem:[#allocation2 + $0x558] sm:$0xff]  ;;  %v3588_v40 = vcombine.high %v1844_v28, %v1848_v29 }
 0x7ad   : > { %v3564_v61 = vcombine.high %v1820_v7, %v1824_v56  ;;  %v1828_v63 = vld [vmem:[#allocation2 + $0x590] sm:$0xff]  ;;  %v1833_v2 = vld [vmem:[#allocation2 + $0x5b8] sm:$0xff] }
 0x7ae   : > { %v1772_v17 = vadd.f32 %v1770_v60, %v1762_v6  ;;  %v1771_v20 = vadd.f32 %v1766_v62, %v1761_v15  ;;  %v3557_v60 = vcombine.low %v1813_v51, %v1817_v52  ;;  %v3566_v62 = vcombine.high %v1821_v57, %v1825_v58  ;;  %v1832_v0 = vld [vmem:[#allocation2 + $0x5b0] sm:$0xff]  ;;  %v1849_v26 = vld [vmem:[#allocation2 + $0x638] sm:$0xff] }
 0x7af   : > { %v3563_v6 = vcombine.low %v1820_v7, %v1824_v56  ;;  %v3565_v15 = vcombine.low %v1821_v57, %v1825_v58  ;;  %v1868_v52 = vld [vmem:[#allocation2 + $0x6d0] sm:$0xff] }
 0x7b0   : > { %v1774_v21 = vadd.f32 %v1772_v17, %v1736_v16  ;;  %v1773_v22 = vadd.f32 %v1771_v20, %v1735_v19  ;;  %v3572_v16 = vcombine.high %v1828_v63, %v1832_v0  ;;  %v3574_v17 = vcombine.high %v1829_v1, %v1833_v2  ;;  %v1836_v19 = vld [vmem:[#allocation2 + $0x5d0] sm:$0xff] }
 0x7b1   : > { %v1840_v20 = vld [vmem:[#allocation2 + $0x5f0] sm:$0xff] }
 0x7b2   : > { %v1776_v54 = vmax.f32 %v1774_v21, 0.0  ;;  %v1775_v38 = vmax.f32 %v1773_v22, 0.0  ;;  %v1837_v21 = vld [vmem:[#allocation2 + $0x5d8] sm:$0xff]  ;;  %v3580_v41 = vcombine.high %v1836_v19, %v1840_v20  ;;  %v1876_v58 = vld [vmem:[#allocation2 + $0x710] sm:$0xff] }
 0x7b3   : > { %v1841_v22 = vld [vmem:[#allocation2 + $0x5f8] sm:$0xff] }
 0x7b4   : > { %v1945_v30 = vpack.c.bf16 %v1776_v54, %v1776_v54  ;;  %v4355_v23 = vpack.c.bf16 %v1775_v38, %v1775_v38  ;;  %v3571_v54 = vcombine.low %v1828_v63, %v1832_v0  ;;  %v3573_v38 = vcombine.low %v1829_v1, %v1833_v2  ;;  %v1884_v2 = vld [vmem:[#allocation2 + $0x750] sm:$0xff] }
 0x7b5   : > { %v3582_v27 = vcombine.high %v1837_v21, %v1841_v22 }
 0x7b6   : > { %2618 = vmatprep.mubr.bf16.mxu1 %v1945_v30  ;;  %2659 = vmatprep.mubr.bf16.mxu0 %v1945_v30 }
 0x7b7   : > { %2619 = vmatmul.mubr.bf16.vlgmr.msra.gmra.mrb[8].mxu1 %v4355_v23  ;;  %2660 = vmatmul.mubr.bf16.vlgmr.msra.gmra.mrb[20].mxu0 %v4355_v23 }
 0x7b8   : > { %2669 = vmatpush1.bf16.msra.mxu1 %v3523_v36  ;;  %2710 = vmatpush1.bf16.msra.mxu0 %v3525_v37  ;;  %v3548_v36 = vcombine.high %v1804_v43, %v1808_v44  ;;  %v3550_v37 = vcombine.high %v1805_v11, %v1809_v45  ;;  %v1860_v45 = vld [vmem:[#allocation2 + $0x690] sm:$0xff] }
 0x7b9   : > { %2700 = vmatprep.mubr.bf16.mxu1 %v1945_v30  ;;  %2741 = vmatprep.mubr.bf16.mxu0 %v1945_v30  ;;  %v1845_v30 = vld [vmem:[#allocation2 + $0x618] sm:$0xff] }
 0x7ba   : > { %2670 = vmatprep.subr.bf16.mxu1 %v3532_v25  ;;  %2711 = vmatprep.subr.bf16.mxu0 %v3534_v31  ;;  %v3579_v25 = vcombine.low %v1836_v19, %v1840_v20  ;;  %v3581_v31 = vcombine.low %v1837_v21, %v1841_v22  ;;  %v3590_v32 = vcombine.high %v1845_v30, %v1849_v26  ;;  %v1892_v22 = vld [vmem:[#allocation2 + $0x790] sm:$0xff] }
 0x7bb   : > { %v3589_v43 = vcombine.low %v1845_v30, %v1849_v26  ;;  %v1900_v26 = vld [vmem:[#allocation2 + $0x7d0] sm:$0xff] }
 0x7bc   : > { %2671 = vmatpush1.bf16.msra.mxu1 %v3531_v42  ;;  %2712 = vmatpush1.bf16.msra.mxu0 %v3533_v4  ;;  %v1856_v42 = vld [vmem:[#allocation2 + $0x670] sm:$0xff]  ;;  %v1853_v4 = vld [vmem:[#allocation2 + $0x658] sm:$0xff] }
 0x7bd   : > { %2672 = vmatprep.subr.bf16.mxu1 %v3540_v35  ;;  %2713 = vmatprep.subr.bf16.mxu0 %v3542_v39  ;;  %v1857_v35 = vld [vmem:[#allocation2 + $0x678] sm:$0xff]  ;;  %v3587_v39 = vcombine.low %v1844_v28, %v1848_v29  ;;  %v3596_v44 = vcombine.high %v1852_v3, %v1856_v42 }
 0x7be   : > { %v3598_v11 = vcombine.high %v1853_v4, %v1857_v35  ;;  %v3597_v48 = vcombine.low %v1853_v4, %v1857_v35 }
 0x7c0   : > { %2673 = vmatpush1.bf16.msra.mxu1 %v3539_v12  ;;  %2714 = vmatpush1.bf16.msra.mxu0 %v3541_v46  ;;  %v1864_v12 = vld [vmem:[#allocation2 + $0x6b0] sm:$0xff]  ;;  %v1861_v46 = vld [vmem:[#allocation2 + $0x698] sm:$0xff] }
 0x7c1   : > { %2674 = vmatprep.subr.bf16.mxu1 %v3548_v36  ;;  %2715 = vmatprep.subr.bf16.mxu0 %v3550_v37  ;;  %v1865_v36 = vld [vmem:[#allocation2 + $0x6b8] sm:$0xff]  ;;  %v3595_v37 = vcombine.low %v1852_v3, %v1856_v42  ;;  %v3604_v49 = vcombine.high %v1860_v45, %v1864_v12 }
 0x7c2   : > { %v3606_v51 = vcombine.high %v1861_v46, %v1865_v36  ;;  %v3605_v7 = vcombine.low %v1861_v46, %v1865_v36 }
 0x7c4   : > { %2675 = vmatpush1.bf16.msra.mxu1 %v3547_v53  ;;  %2716 = vmatpush1.bf16.msra.mxu0 %v3549_v55  ;;  %v1872_v53 = vld [vmem:[#allocation2 + $0x6f0] sm:$0xff]  ;;  %v1869_v55 = vld [vmem:[#allocation2 + $0x6d8] sm:$0xff] }
 0x7c5   : > { %2676 = vmatprep.subr.bf16.mxu1 %v3556_v9  ;;  %2717 = vmatprep.subr.bf16.mxu0 %v3558_v18  ;;  %v1873_v9 = vld [vmem:[#allocation2 + $0x6f8] sm:$0xff]  ;;  %v3603_v18 = vcombine.low %v1860_v45, %v1864_v12  ;;  %v3612_v56 = vcombine.high %v1868_v52, %v1872_v53 }
 0x7c6   : > { %v3614_v57 = vcombine.high %v1869_v55, %v1873_v9  ;;  %v3613_v63 = vcombine.low %v1869_v55, %v1873_v9 }
 0x7c8   : > { %2677 = vmatpush1.bf16.msra.mxu1 %v3555_v59  ;;  %2718 = vmatpush1.bf16.msra.mxu0 %v3557_v60  ;;  %v1880_v59 = vld [vmem:[#allocation2 + $0x730] sm:$0xff]  ;;  %v1877_v60 = vld [vmem:[#allocation2 + $0x718] sm:$0xff] }
 0x7c9   : > { %2678 = vmatprep.subr.bf16.mxu1 %v3564_v61  ;;  %2719 = vmatprep.subr.bf16.mxu0 %v3566_v62  ;;  %v1881_v61 = vld [vmem:[#allocation2 + $0x738] sm:$0xff]  ;;  %v3611_v62 = vcombine.low %v1868_v52, %v1872_v53  ;;  %v3620_v0 = vcombine.high %v1876_v58, %v1880_v59 }
 0x7ca   : > { %v3622_v1 = vcombine.high %v1877_v60, %v1881_v61  ;;  %v3621_v19 = vcombine.low %v1877_v60, %v1881_v61 }
 0x7cc   : > { %2679 = vmatpush1.bf16.msra.mxu1 %v3563_v6  ;;  %2720 = vmatpush1.bf16.msra.mxu0 %v3565_v15  ;;  %v1888_v6 = vld [vmem:[#allocation2 + $0x770] sm:$0xff]  ;;  %v1885_v15 = vld [vmem:[#allocation2 + $0x758] sm:$0xff] }
 0x7cd   : > { %2680 = vmatprep.subr.bf16.mxu1 %v3572_v16  ;;  %2721 = vmatprep.subr.bf16.mxu0 %v3574_v17  ;;  %v1889_v16 = vld [vmem:[#allocation2 + $0x778] sm:$0xff]  ;;  %v3619_v17 = vcombine.low %v1876_v58, %v1880_v59  ;;  %v3628_v20 = vcombine.high %v1884_v2, %v1888_v6 }
 0x7ce   : > { %v3630_v21 = vcombine.high %v1885_v15, %v1889_v16  ;;  %v3629_v28 = vcombine.low %v1885_v15, %v1889_v16 }
 0x7d0   : > { %2681 = vmatpush1.bf16.msra.mxu1 %v3571_v54  ;;  %2722 = vmatpush1.bf16.msra.mxu0 %v3573_v38  ;;  %v1896_v54 = vld [vmem:[#allocation2 + $0x7b0] sm:$0xff]  ;;  %v1893_v38 = vld [vmem:[#allocation2 + $0x798] sm:$0xff] }
 0x7d1   : > { %2682 = vmatprep.subr.bf16.mxu1 %v3580_v41  ;;  %2723 = vmatprep.subr.bf16.mxu0 %v3582_v27  ;;  %v1897_v41 = vld [vmem:[#allocation2 + $0x7b8] sm:$0xff]  ;;  %v3627_v27 = vcombine.low %v1884_v2, %v1888_v6  ;;  %v3636_v29 = vcombine.high %v1892_v22, %v1896_v54 }
 0x7d2   : > { %v3638_v30 = vcombine.high %v1893_v38, %v1897_v41  ;;  %v3637_v3 = vcombine.low %v1893_v38, %v1897_v41 }
 0x7d4   : > { %2683 = vmatpush1.bf16.msra.mxu1 %v3579_v25  ;;  %2724 = vmatpush1.bf16.msra.mxu0 %v3581_v31  ;;  %v1904_v25 = vld [vmem:[#allocation2 + $0x7f0] sm:$0xff]  ;;  %v1901_v31 = vld [vmem:[#allocation2 + $0x7d8] sm:$0xff] }
 0x7d5   : > { %2684 = vmatprep.subr.bf16.mxu1 %v3588_v40  ;;  %2725 = vmatprep.subr.bf16.mxu0 %v3590_v32  ;;  %v1905_v40 = vld [vmem:[#allocation2 + $0x7f8] sm:$0xff]  ;;  %v3635_v32 = vcombine.low %v1892_v22, %v1896_v54  ;;  %v3644_v42 = vcombine.high %v1900_v26, %v1904_v25  ;;  %v3643_v35 = vcombine.low %v1900_v26, %v1904_v25 }
 0x7d6   : > { %v3646_v4 = vcombine.high %v1901_v31, %v1905_v40 }
 0x7d8   : > { %2685 = vmatpush1.bf16.msra.mxu1 %v3587_v39  ;;  %2726 = vmatpush1.bf16.msra.mxu0 %v3589_v43  ;;  %v3645_v39 = vcombine.low %v1901_v31, %v1905_v40  ;;  %v4364_v43 = vld [vmem:[%s4484_s5 + $0x20] sm:$0xff] }
 0x7d9   : > { %2686 = vmatprep.subr.bf16.mxu1 %v3596_v44  ;;  %2727 = vmatprep.subr.bf16.mxu0 %v3598_v11  ;;  %v4369_v44 = vld [vmem:[%s4484_s5 + $0x28] sm:$0xff]  ;;  %v2763_v11 = vrot.slane %v4364_v43, %v4194_v10  ;;  %v2773_v60 = vrot.slane %v4364_v43, %v4219_v33 }
 0x7da   : > { %v2757_v45 = vrot.slane %v4369_v44, %v4207_v13  ;;  %v2767_v12 = vrot.slane %v4369_v44, %v4194_v10  ;;  %v2777_v61 = vrot.slane %v4369_v44, %v4219_v33 }
 0x7dc   : > { %2687 = vmatpush1.bf16.msra.mxu1 %v3595_v37  ;;  %2728 = vmatpush1.bf16.msra.mxu0 %v3597_v48 }
 0x7dd   : > { %2688 = vmatprep.subr.bf16.mxu1 %v3604_v49  ;;  %2729 = vmatprep.subr.bf16.mxu0 %v3606_v51 }
 0x7e0   : > { %2689 = vmatpush1.bf16.msra.mxu1 %v3603_v18  ;;  %2730 = vmatpush1.bf16.msra.mxu0 %v3605_v7  ;;  %v2753_v18 = vrot.slane %v4364_v43, %v4207_v13 }
 0x7e1   : > { %2690 = vmatprep.subr.bf16.mxu1 %v3612_v56  ;;  %2731 = vmatprep.subr.bf16.mxu0 %v3614_v57 }
 0x7e4   : > { %2691 = vmatpush1.bf16.msra.mxu1 %v3611_v62  ;;  %2732 = vmatpush1.bf16.msra.mxu0 %v3613_v63 }
 0x7e5   : > { %2692 = vmatprep.subr.bf16.mxu1 %v3620_v0  ;;  %2733 = vmatprep.subr.bf16.mxu0 %v3622_v1 }
 0x7e8   : > { %2693 = vmatpush1.bf16.msra.mxu1 %v3619_v17  ;;  %2734 = vmatpush1.bf16.msra.mxu0 %v3621_v19 }
 0x7e9   : > { %2694 = vmatprep.subr.bf16.mxu1 %v3628_v20  ;;  %2735 = vmatprep.subr.bf16.mxu0 %v3630_v21 }
 0x7ec   : > { %2695 = vmatpush1.bf16.msra.mxu1 %v3627_v27  ;;  %2736 = vmatpush1.bf16.msra.mxu0 %v3629_v28 }
 0x7ed   : > { %2696 = vmatprep.subr.bf16.mxu1 %v3636_v29  ;;  %2737 = vmatprep.subr.bf16.mxu0 %v3638_v30 }
 0x7f0   : > { %2697 = vmatpush1.bf16.msra.mxu1 %v3635_v32  ;;  %2738 = vmatpush1.bf16.msra.mxu0 %v3637_v3 }
 0x7f1   : > { %2698 = vmatprep.subr.bf16.mxu1 %v3644_v42  ;;  %2739 = vmatprep.subr.bf16.mxu0 %v3646_v4 }
 0x7f4   : > { %2699 = vmatpush1.bf16.msra.mxu1 %v3643_v35  ;;  %2740 = vmatpush1.bf16.msra.mxu0 %v3645_v39 }
 0x7f7   : > { %2701 = vmatmul.mubr.bf16.vlgmr.msra.gmra.mrb[12].mxu1 %v4355_v23  ;;  %2742 = vmatmul.mubr.bf16.vlgmr.msra.gmra.mrb[24].mxu0 %v4355_v23 }
 0x88a   : > { %v2620_v23 = vpop.f32.mrb[8].mxu1  ;;  %v2661_v46 = vpop.f32.mrb[20].mxu0 }
 0x88b   : > { %v2768_v36 = vadd.f32 %v2763_v11, %v2661_v46  ;;  %v2622_v37 = vpop.f32.mrb[9].mxu1  ;;  %v2663_v48 = vpop.f32.mrb[21].mxu0  ;;  %v2758_v58 = vadd.f32 %v2753_v18, %v2620_v23  ;;  %v3807_v23 = vld [vmem:[#allocation5 + $0x114] ss:$8 sps:$4 sm:$0xff]   ;;  %v3805_v46 = vld [vmem:[#allocation5 + $0x110] ss:$8 sps:$4 sm:$0xff]  }
 0x88c   : > { %v2759_v49 = vadd.f32 %v2757_v45, %v2622_v37  ;;  %v2769_v51 = vadd.f32 %v2767_v12, %v2663_v48  ;;  %v2624_v52 = vpop.f32.mrb[10].mxu1  ;;  %v2665_v53 = vpop.f32.mrb[22].mxu0  ;;  %v3802_v45 = vld [vmem:[#allocation5 + $0x100] ss:$8 sps:$4 sm:$0xff]   ;;  %v3804_v12 = vld [vmem:[#allocation5 + $0x104] ss:$8 sps:$4 sm:$0xff]  }
 0x88d   : > { %v2625_v55 = vpop.f32.mrb[11].mxu1  ;;  %v2666_v9 = vpop.f32.mrb[23].mxu0  ;;  %v2792_v57 = vpack.c.bf16 %v2768_v36, %v2768_v36  ;;  %v2790_v59 = vpack.c.bf16 %v2758_v58, %v2758_v58  ;;  %v3810_v36 = vld [vmem:[#allocation5 + $0x124] ss:$8 sps:$4 sm:$0xff]   ;;  %v3808_v37 = vld [vmem:[#allocation5 + $0x120] ss:$8 sps:$4 sm:$0xff]  }
 0x88e   : > { %v2791_v7 = vpack.c.bf16 %v2759_v49, %v2759_v49  ;;  %v2793_v56 = vpack.c.bf16 %v2769_v51, %v2769_v51  ;;  %v3813_v48 = vld [vmem:[#allocation5 + $0x134] ss:$8 sps:$4 sm:$0xff]   ;;  %v3811_v49 = vld [vmem:[#allocation5 + $0x130] ss:$8 sps:$4 sm:$0xff]   ;;  %v3816_v51 = vld [vmem:[#allocation5 + $0x144] ss:$8 sps:$4 sm:$0xff]  }
 0x88f   : > { %v3814_v52 = vld [vmem:[#allocation5 + $0x140] ss:$8 sps:$4 sm:$0xff]   ;;  %v3819_v53 = vld [vmem:[#allocation5 + $0x154] ss:$8 sps:$4 sm:$0xff]   ;;  %v3817_v55 = vld [vmem:[#allocation5 + $0x150] ss:$8 sps:$4 sm:$0xff]  }
 0x890   : > { %2794 = vmatprep.subr.bf16.mxu1 %v2793_v56  ;;  %2826 = vmatprep.mubr.bf16.mxu1 %v2791_v7  ;;  %v3822_v9 = vld [vmem:[#allocation5 + $0x164] ss:$8 sps:$4 sm:$0xff]   ;;  %v3820_v18 = vld [vmem:[#allocation5 + $0x160] ss:$8 sps:$4 sm:$0xff]   ;;  %v3825_v7 = vld [vmem:[#allocation5 + $0x174] ss:$8 sps:$4 sm:$0xff]  }
 0x891   : > { %2795 = vmatpush1.bf16.xpose.msra.mxu1 %v2792_v57  ;;  %v3823_v56 = vld [vmem:[#allocation5 + $0x170] ss:$8 sps:$4 sm:$0xff]   ;;  %v3828_v57 = vld [vmem:[#allocation5 + $0x184] ss:$8 sps:$4 sm:$0xff]   ;;  %v3826_v58 = vld [vmem:[#allocation5 + $0x180] ss:$8 sps:$4 sm:$0xff]  }
 0x898   : > { %2827 = vmatmul.mubr.bf16.vlgmr.msra.gmra.mrb[16].mxu1 %v2790_v59  ;;  %v3831_v59 = vld [vmem:[#allocation5 + $0x194] ss:$8 sps:$4 sm:$0xff]  }
 0x899   : > { %2889 = vmatprep.mubr.bf16.mxu1 %v4006_v5 }
 0x8ca   : > { %v2702_v62 = vpop.f32.mrb[12].mxu1  ;;  %v4384_v63 = vpop.f32.mrb[24].mxu0 }
 0x8cb   : > { %v2778_v0 = vadd.f32 %v2773_v60, %v2702_v62  ;;  %v2704_v1 = vpop.f32.mrb[13].mxu1  ;;  %v4386_v2 = vpop.f32.mrb[25].mxu0  ;;  %v3829_v60 = vld [vmem:[#allocation5 + $0x190] ss:$8 sps:$4 sm:$0xff]  }
 0x8cc   : > { %v2779_v6 = vadd.f32 %v2777_v61, %v2704_v1  ;;  %v2706_v15 = vpop.f32.mrb[14].mxu1  ;;  %v2747_v16 = vpop.f32.mrb[26].mxu0  ;;  %v2787_v1 = vrot.slane %v4369_v44, %v4274_v24 }
 0x8cd   : > { %v2846_v17 = vpack.c.bf16 %v2778_v0, %v2778_v0  ;;  %v2707_v19 = vpop.f32.mrb[15].mxu1  ;;  %v2748_v20 = vpop.f32.mrb[27].mxu0  ;;  %v2783_v0 = vrot.slane %v4364_v43, %v4274_v24  ;;  %v3838_v24 = vld [vmem:[#allocation5 + $0x1c0] ss:$8 sps:$4 sm:$0xff]  }
 0x8ce   : > { %v2847_v5 = vpack.c.bf16 %v2779_v6, %v2779_v6  ;;  %v2789_v20 = vadd.f32 %v2787_v1, %v4386_v2  ;;  %v3844_v2 = vld [vmem:[#allocation5 + $0x1e0] ss:$8 sps:$4 sm:$0xff]  }
 0x8cf   : > { %v2852_v21 = vsel %vm1403_vm0, %v2846_v17, 0  ;;  %v2788_v19 = vadd.f32 %v2783_v0, %v4384_v63  ;;  %v3843_v63 = vld [vmem:[#allocation5 + $0x1d4] ss:$8 sps:$4 sm:$0xff]  }
 0x8d0   : > { %3647 = vmatprep.subr.msk.bf16.mxu1 %vm1403_vm0, %v2847_v5 }
 0x8d1   : > { %2858 = vmatpush1.bf16.msra.mxu1 %v2852_v21  ;;  %v3183_v21 = vadd.f32 %v2789_v20, %v2788_v19 }
 0x8d2   : > { %3106 = vmatprep.subr.bf16.mxu1 %v3804_v12 }
 0x96b   : > { %v2828_v22 = vpop.f32.mrb[16].mxu1 }
 0x96c   : > { %v2829_v54 = vadd.f32 %v2828_v22, %v4231_v50  ;;  %v2830_v38 = vpop.f32.mrb[17].mxu1  ;;  %v3834_v22 = vld [vmem:[#allocation5 + $0x1a4] ss:$8 sps:$4 sm:$0xff]  }
 0x96d   : > { %v2831_v41 = vpop.f32.mrb[18].mxu1  ;;  %v3837_v38 = vld [vmem:[#allocation5 + $0x1b4] ss:$8 sps:$4 sm:$0xff]  }
 0x96e   : > { %v2832_v27 = vpop.f32.mrb[19].mxu1  ;;  %v2834_v28 = vsel %vm1385_vm1, %v2829_v54, -inf  ;;  %v3835_v41 = vld [vmem:[#allocation5 + $0x1b0] ss:$8 sps:$4 sm:$0xff]  }
 0x96f   : > { %2835 = vmax.xlane.f32.xlu1 %v2834_v28  ;;  %v3840_v27 = vld [vmem:[#allocation5 + $0x1c4] ss:$8 sps:$4 sm:$0xff]   ;;  %v3841_v28 = vld [vmem:[#allocation5 + $0x1d0] ss:$8 sps:$4 sm:$0xff]  }
 0x9fc   : > { %v2836_v29 = vpop.xlane.xlu1 %2835 }
 0x9fd   : > { %v2837_v30 = vsub.f32 %v2829_v54, %v2836_v29  ;;  %v3832_v54 = vld [vmem:[#allocation5 + $0x1a0] ss:$8 sps:$4 sm:$0xff]   ;;  %v3846_v29 = vld [vmem:[#allocation5 + $0x1e4] ss:$8 sps:$4 sm:$0xff]  }
 0x9ff   : > { %v2838_v26 = vmul.f32 1.442695, %v2837_v30  ;;  %v3849_v30 = vld [vmem:[#allocation5 + $0x1f4] ss:$8 sps:$4 sm:$0xff]  }
 0xa01   : > { %3860 = vpow2.f32 %v2838_v26  ;;  %v3847_v26 = vld [vmem:[#allocation5 + $0x1f0] ss:$8 sps:$4 sm:$0xff]  }
 0xa0b   : > { %v3861_v25 = vpop.eup %3860 }
 0xa0c   : > { %v2840_v31 = vsel %vm1385_vm1, %v3861_v25, 0.0 }
 0xa0d   : > { %2841 = vadd.xlane.f32.xlu1 %v2840_v31 }
 0xa9a   : > { %v2842_v40 = vpop.xlane.xlu1 %2841 }
 0xa9b   : > { %3862 = vrcp.f32 %v2842_v40 }
 0xaa5   : > { %v3863_v32 = vpop.eup %3862 }
 0xaa6   : > { %v2844_v3 = vmul.f32 %v3863_v32, %v3861_v25 }
 0xaa8   : > { %v2845_v42 = vpack.c.bf16 %v2844_v3, %v2844_v3 }
 0xaaa   : > { %3648 = vmatmul.mubr.msk.bf16.vlgmr.msra.gmra.mrb[20].mxu1 %vm1385_vm1, %v2845_v42 }
 0xaab   : > { %3107 = vmatpush1.bf16.msra.mxu1 %v3802_v45  ;;  %v2917_v45 = vrot.slane %v4364_v43, %v4255_v8 }
 0xaac   : > { %3108 = vmatprep.subr.bf16.mxu1 %v3807_v23 }
 0xaaf   : > { %3109 = vmatpush1.bf16.msra.mxu1 %v3805_v46  ;;  %v2931_v46 = vrot.slane %v4369_v44, %v4258_v14 }
 0xab0   : > { %3110 = vmatprep.subr.bf16.mxu1 %v3810_v36 }
 0xab3   : > { %3111 = vmatpush1.bf16.msra.mxu1 %v3808_v37  ;;  %v2927_v37 = vrot.slane %v4364_v43, %v4258_v14 }
 0xab4   : > { %3112 = vmatprep.subr.bf16.mxu1 %v3813_v48 }
 0xab7   : > { %3113 = vmatpush1.bf16.msra.mxu1 %v3811_v49 }
 0xab8   : > { %3114 = vmatprep.subr.bf16.mxu1 %v3816_v51 }
 0xabb   : > { %3115 = vmatpush1.bf16.msra.mxu1 %v3814_v52 }
 0xabc   : > { %3116 = vmatprep.subr.bf16.mxu1 %v3819_v53 }
 0xabf   : > { %3117 = vmatpush1.bf16.msra.mxu1 %v3817_v55 }
 0xac0   : > { %3118 = vmatprep.subr.bf16.mxu1 %v3822_v9 }
 0xac3   : > { %3119 = vmatpush1.bf16.msra.mxu1 %v3820_v18 }
 0xac4   : > { %3120 = vmatprep.subr.bf16.mxu1 %v3825_v7  ;;  %v2945_v7 = vrot.slane %v4369_v44, %v4271_v34 }
 0xac7   : > { %3121 = vmatpush1.bf16.msra.mxu1 %v3823_v56 }
 0xac8   : > { %3122 = vmatprep.subr.bf16.mxu1 %v3828_v57 }
 0xacb   : > { %3123 = vmatpush1.bf16.msra.mxu1 %v3826_v58 }
 0xacc   : > { %3124 = vmatprep.subr.bf16.mxu1 %v3831_v59 }
 0xacf   : > { %3125 = vmatpush1.bf16.msra.mxu1 %v3829_v60 }
 0xad0   : > { %3126 = vmatprep.subr.bf16.mxu1 %v3834_v22 }
 0xad3   : > { %3127 = vmatpush1.bf16.msra.mxu1 %v3832_v54 }
 0xad4   : > { %3128 = vmatprep.subr.bf16.mxu1 %v3837_v38  ;;  %v3517_v38 = vld [vmem:[%s4484_s5 + $0x30] sm:$0x7] }
 0xad7   : > { %3129 = vmatpush1.bf16.msra.mxu1 %v3835_v41  ;;  %v3518_v41 = vld [vmem:[%s4484_s5 + $0x38] sm:$0x7] }
 0xad8   : > { %3130 = vmatprep.subr.bf16.mxu1 %v3840_v27  ;;  %v3202_v27 = vrot.slane %v3517_v38, %v4194_v10 }
 0xadb   : > { %3131 = vmatpush1.bf16.msra.mxu1 %v3838_v24  ;;  %v3206_v24 = vrot.slane %v3518_v41, %v4194_v10 }
 0xadc   : > { %3132 = vmatprep.subr.bf16.mxu1 %v3843_v63 }
 0xadf   : > { %3133 = vmatpush1.bf16.msra.mxu1 %v3841_v28 }
 0xae0   : > { %3134 = vmatprep.subr.bf16.mxu1 %v3846_v29  ;;  %v3166_v29 = vrot.slane %v4364_v43, %v4329_v47 }
 0xae3   : > { %3135 = vmatpush1.bf16.msra.mxu1 %v3844_v2  ;;  %v3170_v2 = vrot.slane %v4369_v44, %v4329_v47 }
 0xae4   : > { %3136 = vmatprep.subr.bf16.mxu1 %v3849_v30 }
 0xae7   : > { %3137 = vmatpush1.bf16.msra.mxu1 %v3847_v26 }
 0xb7d   : > { %v2891_v50 = vpop.f32.mrb[20].mxu1 }
 0xb7e   : > { %v2893_v4 = vpop.f32.mrb[21].mxu1 }
 0xb7f   : > { %v2895_v35 = vpop.f32.mrb[22].mxu1  ;;  %v2898_v39 = vadd.f32 %v2893_v4, %v2891_v50 }
 0xb80   : > { %v2896_v11 = vpop.f32.mrb[23].mxu1 }
 0xb81   : > { %2899 = vadd.xlane.f32.xlu0 %v2898_v39  ;;  %v2921_v11 = vrot.slane %v4369_v44, %v4255_v8  ;;  %v2941_v8 = vrot.slane %v4364_v43, %v4271_v34 }
 0xc0e   : > { %v2900_v61 = vpop.xlane.xlu0 %2899 }
 0xc0f   : > { %v2901_v62 = vmul.f32 0.00390625, %v2900_v61 }
 0xc11   : > { %v2902_v6 = vsub.f32 %v2891_v50, %v2901_v62  ;;  %v2903_v15 = vsub.f32 %v2893_v4, %v2901_v62 }
 0xc13   : > { %v2904_v16 = vmul.f32 %v2902_v6, %v2902_v6  ;;  %v2905_v17 = vmul.f32 %v2903_v15, %v2903_v15 }
 0xc15   : > { %v2906_v5 = vadd.f32 %v2905_v17, %v2904_v16 }
 0xc17   : > { %2907 = vadd.xlane.f32.xlu1 %v2906_v5 }
 0xc1b   : > { %3184 = vadd.xlane.f32.xlu1 %v3183_v21 }
 0xca4   : > { %v2908_v25 = vpop.xlane.xlu1 %2907 }
 0xca5   : > { %v2909_v31 = vmul.f32 0.00390625, %v2908_v25 }
 0xca7   : > { %v2910_v40 = vadd.f32 1e-05, %v2909_v31  ;;  %v3212_v31 = vrot.slane %v3517_v38, %v4219_v33 }
 0xca8   : > { %v3185_v32 = vpop.xlane.xlu1 %3184 }
 0xca9   : > { %3864 = vrsqrt.f32 %v2910_v40  ;;  %v3186_v3 = vmul.f32 0.00390625, %v3185_v32  ;;  %v3216_v40 = vrot.slane %v3518_v41, %v4219_v33 }
 0xcab   : > { %v3187_v42 = vsub.f32 %v2788_v19, %v3186_v3  ;;  %v3188_v50 = vsub.f32 %v2789_v20, %v3186_v3  ;;  %v3176_v3 = vrot.slane %v3517_v38, %v4207_v13 }
 0xcad   : > { %v3189_v4 = vmul.f32 %v3187_v42, %v3187_v42  ;;  %v3190_v35 = vmul.f32 %v3188_v50, %v3188_v50 }
 0xcaf   : > { %v3191_v39 = vadd.f32 %v3190_v35, %v3189_v4 }
 0xcb1   : > { %3192 = vadd.xlane.f32.xlu1 %v3191_v39 }
 0xcb3   : > { %v3865_v12 = vpop.eup %3864 }
 0xcb4   : > { %v2913_v23 = vmul.f32 %v3865_v12, %v2903_v15  ;;  %v2912_v36 = vmul.f32 %v3865_v12, %v2902_v6 }
 0xcb6   : > { %v2923_v48 = vmul.f32 %v2921_v11, %v2913_v23  ;;  %v2922_v49 = vmul.f32 %v2917_v45, %v2912_v36 }
 0xcb8   : > { %v2933_v51 = vadd.f32 %v2931_v46, %v2923_v48  ;;  %v2932_v52 = vadd.f32 %v2927_v37, %v2922_v49 }
 0xcba   : > { %v2935_v53 = vmax.f32 %v2933_v51, 0.0  ;;  %v2934_v55 = vmax.f32 %v2932_v52, 0.0 }
 0xcbc   : > { %v2937_v9 = vpack.c.bf16 %v2935_v53, %v2935_v53  ;;  %v2936_v18 = vpack.c.bf16 %v2934_v55, %v2934_v55 }
 0xcbe   : > { %3138 = vmatprep.mubr.bf16.mxu1 %v2937_v9 }
 0xcbf   : > { %3139 = vmatmul.mubr.bf16.vlgmr.msra.gmra.mrb[24].mxu1 %v2936_v18 }
 0xd3e   : > { %v3193_v19 = vpop.xlane.xlu1 %3192 }
 0xd3f   : > { %v3194_v34 = vmul.f32 0.00390625, %v3193_v19 }
 0xd41   : > { %v3195_v20 = vadd.f32 1e-05, %v3194_v34 }
 0xd43   : > { %3866 = vrsqrt.f32 %v3195_v20 }
 0xd4d   : > { %v3867_v54 = vpop.eup %3866 }
 0xd4e   : > { %v3197_v28 = vmul.f32 %v3867_v54, %v3187_v42  ;;  %v3198_v63 = vmul.f32 %v3867_v54, %v3188_v50  ;;  %v3180_v42 = vrot.slane %v3518_v41, %v4207_v13 }
 0xd50   : > { %v3207_v26 = vmul.f32 %v3202_v27, %v3197_v28  ;;  %v3208_v25 = vmul.f32 %v3206_v24, %v3198_v63 }
 0xd52   : > { %v3217_v44 = vadd.f32 %v3212_v31, %v3207_v26  ;;  %v3218_v35 = vadd.f32 %v3216_v40, %v3208_v25 }
 0xd92   : > { %v3140_v56 = vpop.f32.mrb[24].mxu1 }
 0xd93   : > { %v3141_v57 = vadd.f32 %v3140_v56, %v2941_v8  ;;  %v3142_v58 = vpop.f32.mrb[25].mxu1 }
 0xd94   : > { %v3143_v14 = vadd.f32 %v3142_v58, %v2945_v7  ;;  %v3144_v59 = vpop.f32.mrb[26].mxu1 }
 0xd95   : > { %v3145_v60 = vpop.f32.mrb[27].mxu1 }
 0xd96   : > { %v3147_v61 = vadd.f32 %v3143_v14, %v3141_v57 }
 0xd98   : > { %3148 = vadd.xlane.f32.xlu0 %v3147_v61 }
 0xe25   : > { %v3149_v62 = vpop.xlane.xlu0 %3148 }
 0xe26   : > { %v3150_v0 = vmul.f32 0.00390625, %v3149_v62 }
 0xe28   : > { %v3151_v1 = vsub.f32 %v3141_v57, %v3150_v0  ;;  %v3152_v6 = vsub.f32 %v3143_v14, %v3150_v0 }
 0xe2a   : > { %v3153_v15 = vmul.f32 %v3151_v1, %v3151_v1  ;;  %v3154_v16 = vmul.f32 %v3152_v6, %v3152_v6 }
 0xe2c   : > { %v3155_v17 = vadd.f32 %v3154_v16, %v3153_v15 }
 0xe2e   : > { %3156 = vadd.xlane.f32.xlu0 %v3155_v17 }
 0xebb   : > { %v3157_v5 = vpop.xlane.xlu0 %3156 }
 0xebc   : > { %v3158_v21 = vmul.f32 0.00390625, %v3157_v5 }
 0xebe   : > { %v3159_v22 = vadd.f32 1e-05, %v3158_v21 }
 0xec0   : > { %3868 = vrsqrt.f32 %v3159_v22 }
 0xeca   : > { %v3869_v30 = vpop.eup %3868 }
 0xecb   : > { %v3161_v32 = vmul.f32 %v3869_v30, %v3151_v1  ;;  %v3162_v10 = vmul.f32 %v3869_v30, %v3152_v6 }
 0xecd   : > { %v3171_v50 = vmul.f32 %v3166_v29, %v3161_v32  ;;  %v3172_v4 = vmul.f32 %v3170_v2, %v3162_v10 }
 0xecf   : > { %v3181_v47 = vadd.f32 %v3176_v3, %v3171_v50  ;;  %v3182_v43 = vadd.f32 %v3180_v42, %v3172_v4 }
 0xed1   : > { %v3219_v39 = vadd.f32 %v3217_v44, %v3181_v47  ;;  %v3220_v11 = vadd.f32 %v3218_v35, %v3182_v43 }
 0xed3   : > { %3221 = vst [vmem:[%s298_s18] sm:$0xff] %v3219_v39  ;;  %3222 = vst [vmem:[%s298_s18 + $0x8] sm:$0xff] %v3220_v11 }
 0xed4   : > { %3941 = shalt.err (!%p3938_p11)
}
 0xed5   : > { %s3942_s15 = scalar_lea.hbm %s4435_s28, 256  ;;  %s3946_s14 = scalar_lea.hbm %s4485_s6, 512 }
 0xed6   : > { %p3943_p13 = scmp.ne.s32.totalorder %s4435_s28, %s3942_s15  ;;  %p3947_p6 = scmp.lt.u32.totalorder %s4435_s28, %s4485_s6 }
 0xed7   : > { %p3948_p9 = scmp.lt.u32.totalorder %s3946_s14, %s3942_s15  ;;  %p3950_p10 = scmp.lt.u32.totalorder %s3942_s15, %s4435_s28 }
 0xed8   : > { %p3944_p0 = pnand %p3943_p13, %p4498_p1 }
 0xed9   : > { %p3949_p12 = por %p3948_p9, %p3947_p6 }
 0xeda   : > { %p3945_p5 = pneg %p3944_p0 }
 0xedb   : > { %p3951_p2 = por %p3950_p10, %p3949_p12 }
 0xedd   : > { %p3952_p3 = pnand %p3951_p2, %p3945_p5 }
 0xedf   : > { %3955 = shalt.err (!%p3952_p3)
}
 0xee0   : > { %3696 = dma.vmem_to_hbm [thread:$0]  (%p4498_p1), %s4437_s19, 256, %s4435_s28, %s3224_s25  }
 0xee1 PF: > { %p3713_p4 = scmp.ge.s32.totalorder %s3998_s24, 2  ;;  %s3250_s18 = sand.u32 1, %s3986_s21  }
 0xee2   : > { %p4499_p7 = scmp.ne.s32.totalorder %s4490_s8, 0  ;;  %s3251_s20 = scalar_lea.sflag [#allocation4], %s3250_s18 }
 0xee4   : > { %p3706_p8 = pnand %p3713_p4, %p4499_p7 }
 0xee6   : > { %3981 = dma.done.wait (!%p3706_p8), %s3251_s20, 256  }
 0xee7   : > { %3983 = vsyncadd (!%p3706_p8), %s3251_s20, 4294967040  ;;  %p18_p11 = scmp.ge.s32.totalorder %s4068_s27, 4   ;;  %s4500_s21 = smov %s3990_s22 }
 0xee8   : > { %s4501_s22 = smov %s3994_s23  ;;  %s4502_s23 = smov %s4079_s30 }
 0xee9   : > { %s4503_s24 = smov %s4068_s27  ;;  %20 = sbr.rel (!%p18_p11) target bundleno = 5 (0x5), region = 97 }
 0xef0   :  { %3256 = vsyncpa [#allocation3], 1 }
 0xef1   :  { %3258 = vsyncpa [#allocation3 + $0x1], 1 }
 0xef2   :  { %3259 = vsyncpa [#allocation6], 1 }
 0xef3   :  { %3260 = vsyncpa [#allocation4], 1 }
 0xef4   :  { %3262 = vsyncpa [#allocation4 + $0x1], 1 }

</bundles_post_ra>
